<compile_context>
chip_gen: v5e
topology: v5e:2x2
jax: 0.10.0
libtpu: 0.0.40
codegen_flags: <defaults>
</compile_context>

<pallas_src>
import numpy as np

import jax
import jax.numpy as jnp
from jax.experimental import pallas as pl
from jax.experimental.pallas import tpu as pltpu


# ---------------------------------------------------------------------------
# Static helpers (run once, outside the forward pass)
# ---------------------------------------------------------------------------
def _conv_size_out(size, kernel_size=3, stride=2):
    return (size - (kernel_size - 1) - 1) // stride + 1


def _round_up(x, m):
    return ((x + m - 1) // m) * m


def _make_selection_matrix(h_in, w_in, in_rows, ksize=3, stride=2, pad_to=8):
    """0/1 gather matrix S of shape (k*k*how_pad, in_rows).

    Row (t*how_pad + oh*Wo + ow) selects input row (stride*oh+kh)*w_in +
    (stride*ow+kw) for tap t = kh*ksize + kw; rows [how, how_pad) of each tap
    block are zero padding so in-kernel tap slices are 8-row aligned.
    `in_rows` is the (possibly padded) row count of the input activation; the
    valid input positions occupy its first h_in*w_in rows in row-major order.
    """
    ho = _conv_size_out(h_in, ksize, stride)
    wo = _conv_size_out(w_in, ksize, stride)
    how = ho * wo
    how_pad = _round_up(how, pad_to)
    sel = np.zeros((ksize * ksize, how_pad, in_rows), np.float32)
    for kh in range(ksize):
        for kw in range(ksize):
            t = kh * ksize + kw
            for oh in range(ho):
                for ow in range(wo):
                    src = (stride * oh + kh) * w_in + (stride * ow + kw)
                    sel[t, oh * wo + ow, src] = 1.0
    return sel.reshape(ksize * ksize * how_pad, in_rows), (ho, wo, how_pad)


def init_dqn_params(key, h, w, output_dim):
    """Random parameters mimicking the PyTorch DQN module (BN in eval mode)."""
    def conv_block(key, cin, cout):
        k1, k2, k3, k4, k5, k6 = jax.random.split(key, 6)
        return dict(
            w=0.1 * jax.random.normal(k1, (cout, cin, 3, 3), jnp.float32),
            b=0.1 * jax.random.normal(k2, (cout,), jnp.float32),
            gamma=1.0 + 0.1 * jax.random.normal(k3, (cout,), jnp.float32),
            beta=0.1 * jax.random.normal(k4, (cout,), jnp.float32),
            mean=0.1 * jax.random.normal(k5, (cout,), jnp.float32),
            var=jnp.abs(jax.random.normal(k6, (cout,), jnp.float32)) + 0.5,
        )

    conv_w = _conv_size_out(_conv_size_out(_conv_size_out(w)))
    conv_h = _conv_size_out(_conv_size_out(_conv_size_out(h)))
    lin_in = conv_w * conv_h * 64

    k1, k2, k3, k4, k5 = jax.random.split(key, 5)
    return dict(
        conv1=conv_block(k1, 12, 16),
        conv2=conv_block(k2, 16, 32),
        conv3=conv_block(k3, 32, 64),
        linear=dict(
            w=0.1 * jax.random.normal(k4, (output_dim, lin_in), jnp.float32),
            b=0.1 * jax.random.normal(k5, (output_dim,), jnp.float32),
        ),
    )


def _block_diag(mat, n):
    """(a, b) -> (n*a, n*b) block-diagonal replication (batch folded to lanes)."""
    a, b = mat.shape
    eye = jnp.eye(n, dtype=mat.dtype)
    out = eye[:, None, :, None] * mat[None, :, None, :]        # (n, a, n, b)
    return out.reshape(n * a, n * b)


def prepare_dqn_params(params, h, w, batch, eps=1e-5):
    """One-time prep: fold BN into conv weights/bias, build padded selection
    matrices, fold the NCHW .view() flatten into the linear weight, expand all
    weights block-diagonally over the batch, and cast MXU operands to bf16."""

    def fold_conv(c, n):
        scale = c["gamma"] / jnp.sqrt(c["var"] + eps)            # [Cout]
        w_eff = c["w"] * scale[:, None, None, None]              # [Cout,Cin,3,3]
        b_eff = scale * (c["b"] - c["mean"]) + c["beta"]         # [Cout]
        cout, cin, k, _ = c["w"].shape
        # [Cout,Cin,kh,kw] -> [kh,kw,Cin,Cout] -> [k*k, Cin, Cout] (tap-major)
        w_taps = jnp.transpose(w_eff, (2, 3, 1, 0)).reshape(k * k, cin, cout)
        w_blk = jnp.stack([_block_diag(w_taps[t], n) for t in range(k * k)])
        b_blk = jnp.tile(b_eff, n).reshape(1, n * cout)
        return w_blk.astype(jnp.bfloat16), b_blk.astype(jnp.float32)

    w1b, b1b = fold_conv(params["conv1"], batch)
    w2b, b2b = fold_conv(params["conv2"], batch)
    w3b, b3b = fold_conv(params["conv3"], batch)

    s1_np, (h1, w1o, how1_pad) = _make_selection_matrix(h, w, h * w)
    s2_np, (h2, w2o, how2_pad) = _make_selection_matrix(h1, w1o, how1_pad)
    s3_np, (h3, w3o, _) = _make_selection_matrix(h2, w2o, how2_pad)
    s1 = jnp.asarray(s1_np, jnp.bfloat16)
    s2 = jnp.asarray(s2_np, jnp.bfloat16)
    s3 = jnp.asarray(s3_np, jnp.bfloat16)

    # Fold PyTorch's NCHW .view() flatten into the linear weight:
    # torch flat index = c*how3 + o  ->  wl_per_o[o, c, k] = W_lin[k, c*how3 + o]
    how3 = h3 * w3o
    c3 = params["conv3"]["w"].shape[0]
    wl_t = params["linear"]["w"]                                 # [out_dim, c3*how3]
    out_dim = wl_t.shape[0]
    assert wl_t.shape[1] == c3 * how3, (wl_t.shape, c3, how3)
    wl_per_o = jnp.transpose(wl_t.reshape(out_dim, c3, how3), (2, 1, 0))
    wl_blk = jnp.stack([_block_diag(wl_per_o[o], batch) for o in range(how3)])
    wl_blk = wl_blk.astype(jnp.bfloat16)                         # (how3, N*c3, N*out)
    bl_blk = jnp.tile(params["linear"]["b"], batch).reshape(
        1, batch * out_dim).astype(jnp.float32)

    return (s1, w1b, b1b, s2, w2b, b2b, s3, w3b, b3b, wl_blk, bl_blk)


# ---------------------------------------------------------------------------
# Fused Pallas kernel: whole DQN forward for the whole batch in one step
# ---------------------------------------------------------------------------
def _dqn_fused_kernel(x_ref,
                      s1_ref, w1_ref, b1_ref,
                      s2_ref, w2_ref, b2_ref,
                      s3_ref, w3_ref, b3_ref,
                      wl_ref, bl_ref,
                      o_ref):
    def conv_bn_relu(a_bf16, s_ref, w_ref, b_ref):
        n_taps = w_ref.shape[0]
        how_pad = s_ref.shape[0] // n_taps                       # multiple of 8
        # In-kernel im2col: one MXU matmul against the 0/1 selection matrix
        # gathers all 9 taps (exact; accumulation is f32).
        p = jnp.dot(s_ref[...], a_bf16,
                    preferred_element_type=jnp.float32)          # (9*how_pad, N*Cin)
        acc = None
        for t in range(n_taps):                                  # unrolled, 9 taps
            # Tap slices are 8-row aligned (how_pad % 8 == 0): no relayouts.
            tap = p[t * how_pad:(t + 1) * how_pad, :].astype(jnp.bfloat16)
            d = jnp.dot(tap, w_ref[t], preferred_element_type=jnp.float32)
            acc = d if acc is None else acc + d
        acc = jnp.maximum(acc + b_ref[...], 0.0)                 # folded BN bias + ReLU
        return acc.astype(jnp.bfloat16)

    a = x_ref[...]                                               # (H*W, N*Cin) bf16
    a = conv_bn_relu(a, s1_ref, w1_ref, b1_ref)                  # (how1_pad, N*16)
    a = conv_bn_relu(a, s2_ref, w2_ref, b2_ref)                  # (how2_pad, N*32)
    a = conv_bn_relu(a, s3_ref, w3_ref, b3_ref)                  # (how3_pad, N*64)

    # Linear; the NCHW flatten order is pre-folded into wl_ref (per spatial o).
    how3 = wl_ref.shape[0]                                       # valid positions only
    y = bl_ref[...]                                              # (1, N*out_dim) f32
    for o in range(how3):                                        # unrolled (1 iter here)
        y = y + jnp.dot(a[o:o + 1, :], wl_ref[o],
                        preferred_element_type=jnp.float32)
    o_ref[...] = y


@jax.jit
def dqn_forward(prepared, x_nchw):
    (s1, w1, b1, s2, w2, b2, s3, w3, b3, wl, bl) = prepared
    n, cin, h, w = x_nchw.shape
    assert w1.shape[1] == n * cin, "prepared params were built for a different batch"
    n_out = bl.shape[-1]                                         # N * out_dim
    out_dim = n_out // n

    # Boundary layout plumbing only: NCHW -> (H*W, N*C), bf16 MXU operand.
    x = jnp.transpose(x_nchw, (2, 3, 0, 1)).reshape(h * w, n * cin).astype(jnp.bfloat16)

    def full_spec(arr):
        nd = arr.ndim
        return pl.BlockSpec(arr.shape, lambda i, _nd=nd: (0,) * _nd)

    args = (x, s1, w1, b1, s2, w2, b2, s3, w3, b3, wl, bl)

    out = pl.pallas_call(
        _dqn_fused_kernel,
        out_shape=jax.ShapeDtypeStruct((1, n_out), jnp.float32),
        grid=(1,),
        in_specs=[full_spec(a) for a in args],
        out_specs=pl.BlockSpec((1, n_out), lambda i: (0, 0)),
        compiler_params=pltpu.CompilerParams(
            dimension_semantics=("arbitrary",),
            vmem_limit_bytes=32 * 1024 * 1024,
        ),
    )(*args)
    return out.reshape(n, out_dim)


# ---------------------------------------------------------------------------
# Pure-XLA f32 reference (conv + BN(eval) + ReLU x3, NCHW flatten, linear)
# ---------------------------------------------------------------------------
def _reference_forward(params, x_nchw, eps=1e-5):
    x = x_nchw
    for name in ("conv1", "conv2", "conv3"):
        p = params[name]
        x = jax.lax.conv_general_dilated(
            x, p["w"], window_strides=(2, 2), padding="VALID",
            dimension_numbers=("NCHW", "OIHW", "NCHW"))
        x = x + p["b"][None, :, None, None]
        x = (x - p["mean"][None, :, None, None]) / jnp.sqrt(
            p["var"] + eps)[None, :, None, None]
        x = x * p["gamma"][None, :, None, None] + p["beta"][None, :, None, None]
        x = jnp.maximum(x, 0.0)
    x_flat = x.reshape(x.shape[0], -1)                           # PyTorch .view order
    return x_flat @ params["linear"]["w"].T + params["linear"]["b"]


# ---------------------------------------------------------------------------
if __name__ == "__main__":
    key = jax.random.PRNGKey(0)
    kp, kx = jax.random.split(key)

    batch, in_ch, h, w, output_dim = 2, 12, 16, 16, 4
    params = init_dqn_params(kp, h, w, output_dim)
    prepared = prepare_dqn_params(params, h, w, batch)   # one-time BN fold / weight prep
    x = jax.random.normal(kx, (batch, in_ch, h, w), jnp.float32)

    out = dqn_forward(prepared, x)
    out = jax.block_until_ready(out)
    assert out.shape == (batch, output_dim), out.shape

    # Correctness vs f32 XLA reference (kernel uses bf16 MXU operands).
    ref = _reference_forward(params, x)
    err = float(jnp.max(jnp.abs(out - ref)))
    assert err < 0.25, f"mismatch vs reference: max abs err {err}"

    print("KERNEL_OK")
</pallas_src>

<mosaic_0001>
module attributes {stable_mosaic.version = 11 : i64} {
  func.func @_dqn_fused_kernel(%arg0: i32, %arg1: memref<256x24xbf16, #tpu.memory_space<vmem>>, %arg2: memref<504x256xbf16, #tpu.memory_space<vmem>>, %arg3: memref<9x24x32xbf16, #tpu.memory_space<vmem>>, %arg4: memref<1x32xf32, #tpu.memory_space<vmem>>, %arg5: memref<144x56xbf16, #tpu.memory_space<vmem>>, %arg6: memref<9x32x64xbf16, #tpu.memory_space<vmem>>, %arg7: memref<1x64xf32, #tpu.memory_space<vmem>>, %arg8: memref<72x16xbf16, #tpu.memory_space<vmem>>, %arg9: memref<9x64x128xbf16, #tpu.memory_space<vmem>>, %arg10: memref<1x128xf32, #tpu.memory_space<vmem>>, %arg11: memref<1x128x8xbf16, #tpu.memory_space<vmem>>, %arg12: memref<1x8xf32, #tpu.memory_space<vmem>>, %arg13: memref<1x8xf32, #tpu.memory_space<vmem>>) attributes {dimension_semantics = [#tpu.dimension_semantics<arbitrary>], iteration_bounds = array<i64: 1>, scalar_prefetch = 0 : i64, scratch_operands = 0 : i64, tpu.core_type = #tpu.core_type<tc>, window_params = [{pipeline_mode = #tpu.pipeline_mode<synchronous>, transform_indices = @transform_0, window_bounds = array<i64: 256, 24>}, {pipeline_mode = #tpu.pipeline_mode<synchronous>, transform_indices = @transform_1, window_bounds = array<i64: 504, 256>}, {pipeline_mode = #tpu.pipeline_mode<synchronous>, transform_indices = @transform_2, window_bounds = array<i64: 9, 24, 32>}, {pipeline_mode = #tpu.pipeline_mode<synchronous>, transform_indices = @transform_3, window_bounds = array<i64: 1, 32>}, {pipeline_mode = #tpu.pipeline_mode<synchronous>, transform_indices = @transform_4, window_bounds = array<i64: 144, 56>}, {pipeline_mode = #tpu.pipeline_mode<synchronous>, transform_indices = @transform_5, window_bounds = array<i64: 9, 32, 64>}, {pipeline_mode = #tpu.pipeline_mode<synchronous>, transform_indices = @transform_6, window_bounds = array<i64: 1, 64>}, {pipeline_mode = #tpu.pipeline_mode<synchronous>, transform_indices = @transform_7, window_bounds = array<i64: 72, 16>}, {pipeline_mode = #tpu.pipeline_mode<synchronous>, transform_indices = @transform_8, window_bounds = array<i64: 9, 64, 128>}, {pipeline_mode = #tpu.pipeline_mode<synchronous>, transform_indices = @transform_9, window_bounds = array<i64: 1, 128>}, {pipeline_mode = #tpu.pipeline_mode<synchronous>, transform_indices = @transform_10, window_bounds = array<i64: 1, 128, 8>}, {pipeline_mode = #tpu.pipeline_mode<synchronous>, transform_indices = @transform_11, window_bounds = array<i64: 1, 8>}, {pipeline_mode = #tpu.pipeline_mode<synchronous>, transform_indices = @transform_12, window_bounds = array<i64: 1, 8>}]} {
    %c0 = arith.constant 0 : index
    %c0_0 = arith.constant 0 : index
    %0 = vector.load %arg1[%c0, %c0_0] : memref<256x24xbf16, #tpu.memory_space<vmem>>, vector<256x24xbf16>
    %c0_1 = arith.constant 0 : index
    %c0_2 = arith.constant 0 : index
    %1 = vector.load %arg2[%c0_1, %c0_2] : memref<504x256xbf16, #tpu.memory_space<vmem>>, vector<504x256xbf16>
    %cst = arith.constant dense<0.000000e+00> : vector<504x24xf32>
    %2 = tpu.matmul %1, %0, %cst {dimension_numbers = #tpu.dot_dimension_numbers<[1], [0], [0], [1], [0, 0, 1, 1], [], []>} : vector<504x256xbf16>, vector<256x24xbf16>, vector<504x24xf32> -> vector<504x24xf32>
    %3 = vector.extract_strided_slice %2 {offsets = [0, 0], sizes = [56, 24], strides = [1, 1]} : vector<504x24xf32> to vector<56x24xf32>
    %4 = arith.truncf %3 : vector<56x24xf32> to vector<56x24xbf16>
    %c0_3 = arith.constant 0 : index
    %c0_4 = arith.constant 0 : index
    %c0_5 = arith.constant 0 : index
    %5 = vector.load %arg3[%c0_3, %c0_4, %c0_5] : memref<9x24x32xbf16, #tpu.memory_space<vmem>>, vector<1x24x32xbf16>
    %6 = vector.shape_cast %5 : vector<1x24x32xbf16> to vector<24x32xbf16>
    %cst_6 = arith.constant dense<0.000000e+00> : vector<56x32xf32>
    %7 = tpu.matmul %4, %6, %cst_6 {dimension_numbers = #tpu.dot_dimension_numbers<[1], [0], [0], [1], [0, 0, 1, 1], [], []>} : vector<56x24xbf16>, vector<24x32xbf16>, vector<56x32xf32> -> vector<56x32xf32>
    %8 = vector.extract_strided_slice %2 {offsets = [56, 0], sizes = [56, 24], strides = [1, 1]} : vector<504x24xf32> to vector<56x24xf32>
    %9 = arith.truncf %8 : vector<56x24xf32> to vector<56x24xbf16>
    %c1 = arith.constant 1 : index
    %c0_7 = arith.constant 0 : index
    %c0_8 = arith.constant 0 : index
    %10 = vector.load %arg3[%c1, %c0_7, %c0_8] : memref<9x24x32xbf16, #tpu.memory_space<vmem>>, vector<1x24x32xbf16>
    %11 = vector.shape_cast %10 : vector<1x24x32xbf16> to vector<24x32xbf16>
    %cst_9 = arith.constant dense<0.000000e+00> : vector<56x32xf32>
    %12 = tpu.matmul %9, %11, %cst_9 {dimension_numbers = #tpu.dot_dimension_numbers<[1], [0], [0], [1], [0, 0, 1, 1], [], []>} : vector<56x24xbf16>, vector<24x32xbf16>, vector<56x32xf32> -> vector<56x32xf32>
    %13 = arith.addf %7, %12 : vector<56x32xf32>
    %14 = vector.extract_strided_slice %2 {offsets = [112, 0], sizes = [56, 24], strides = [1, 1]} : vector<504x24xf32> to vector<56x24xf32>
    %15 = arith.truncf %14 : vector<56x24xf32> to vector<56x24xbf16>
    %c2 = arith.constant 2 : index
    %c0_10 = arith.constant 0 : index
    %c0_11 = arith.constant 0 : index
    %16 = vector.load %arg3[%c2, %c0_10, %c0_11] : memref<9x24x32xbf16, #tpu.memory_space<vmem>>, vector<1x24x32xbf16>
    %17 = vector.shape_cast %16 : vector<1x24x32xbf16> to vector<24x32xbf16>
    %cst_12 = arith.constant dense<0.000000e+00> : vector<56x32xf32>
    %18 = tpu.matmul %15, %17, %cst_12 {dimension_numbers = #tpu.dot_dimension_numbers<[1], [0], [0], [1], [0, 0, 1, 1], [], []>} : vector<56x24xbf16>, vector<24x32xbf16>, vector<56x32xf32> -> vector<56x32xf32>
    %19 = arith.addf %13, %18 : vector<56x32xf32>
    %20 = vector.extract_strided_slice %2 {offsets = [168, 0], sizes = [56, 24], strides = [1, 1]} : vector<504x24xf32> to vector<56x24xf32>
    %21 = arith.truncf %20 : vector<56x24xf32> to vector<56x24xbf16>
    %c3 = arith.constant 3 : index
    %c0_13 = arith.constant 0 : index
    %c0_14 = arith.constant 0 : index
    %22 = vector.load %arg3[%c3, %c0_13, %c0_14] : memref<9x24x32xbf16, #tpu.memory_space<vmem>>, vector<1x24x32xbf16>
    %23 = vector.shape_cast %22 : vector<1x24x32xbf16> to vector<24x32xbf16>
    %cst_15 = arith.constant dense<0.000000e+00> : vector<56x32xf32>
    %24 = tpu.matmul %21, %23, %cst_15 {dimension_numbers = #tpu.dot_dimension_numbers<[1], [0], [0], [1], [0, 0, 1, 1], [], []>} : vector<56x24xbf16>, vector<24x32xbf16>, vector<56x32xf32> -> vector<56x32xf32>
    %25 = arith.addf %19, %24 : vector<56x32xf32>
    %26 = vector.extract_strided_slice %2 {offsets = [224, 0], sizes = [56, 24], strides = [1, 1]} : vector<504x24xf32> to vector<56x24xf32>
    %27 = arith.truncf %26 : vector<56x24xf32> to vector<56x24xbf16>
    %c4 = arith.constant 4 : index
    %c0_16 = arith.constant 0 : index
    %c0_17 = arith.constant 0 : index
    %28 = vector.load %arg3[%c4, %c0_16, %c0_17] : memref<9x24x32xbf16, #tpu.memory_space<vmem>>, vector<1x24x32xbf16>
    %29 = vector.shape_cast %28 : vector<1x24x32xbf16> to vector<24x32xbf16>
    %cst_18 = arith.constant dense<0.000000e+00> : vector<56x32xf32>
    %30 = tpu.matmul %27, %29, %cst_18 {dimension_numbers = #tpu.dot_dimension_numbers<[1], [0], [0], [1], [0, 0, 1, 1], [], []>} : vector<56x24xbf16>, vector<24x32xbf16>, vector<56x32xf32> -> vector<56x32xf32>
    %31 = arith.addf %25, %30 : vector<56x32xf32>
    %32 = vector.extract_strided_slice %2 {offsets = [280, 0], sizes = [56, 24], strides = [1, 1]} : vector<504x24xf32> to vector<56x24xf32>
    %33 = arith.truncf %32 : vector<56x24xf32> to vector<56x24xbf16>
    %c5 = arith.constant 5 : index
    %c0_19 = arith.constant 0 : index
    %c0_20 = arith.constant 0 : index
    %34 = vector.load %arg3[%c5, %c0_19, %c0_20] : memref<9x24x32xbf16, #tpu.memory_space<vmem>>, vector<1x24x32xbf16>
    %35 = vector.shape_cast %34 : vector<1x24x32xbf16> to vector<24x32xbf16>
    %cst_21 = arith.constant dense<0.000000e+00> : vector<56x32xf32>
    %36 = tpu.matmul %33, %35, %cst_21 {dimension_numbers = #tpu.dot_dimension_numbers<[1], [0], [0], [1], [0, 0, 1, 1], [], []>} : vector<56x24xbf16>, vector<24x32xbf16>, vector<56x32xf32> -> vector<56x32xf32>
    %37 = arith.addf %31, %36 : vector<56x32xf32>
    %38 = vector.extract_strided_slice %2 {offsets = [336, 0], sizes = [56, 24], strides = [1, 1]} : vector<504x24xf32> to vector<56x24xf32>
    %39 = arith.truncf %38 : vector<56x24xf32> to vector<56x24xbf16>
    %c6 = arith.constant 6 : index
    %c0_22 = arith.constant 0 : index
    %c0_23 = arith.constant 0 : index
    %40 = vector.load %arg3[%c6, %c0_22, %c0_23] : memref<9x24x32xbf16, #tpu.memory_space<vmem>>, vector<1x24x32xbf16>
    %41 = vector.shape_cast %40 : vector<1x24x32xbf16> to vector<24x32xbf16>
    %cst_24 = arith.constant dense<0.000000e+00> : vector<56x32xf32>
    %42 = tpu.matmul %39, %41, %cst_24 {dimension_numbers = #tpu.dot_dimension_numbers<[1], [0], [0], [1], [0, 0, 1, 1], [], []>} : vector<56x24xbf16>, vector<24x32xbf16>, vector<56x32xf32> -> vector<56x32xf32>
    %43 = arith.addf %37, %42 : vector<56x32xf32>
    %44 = vector.extract_strided_slice %2 {offsets = [392, 0], sizes = [56, 24], strides = [1, 1]} : vector<504x24xf32> to vector<56x24xf32>
    %45 = arith.truncf %44 : vector<56x24xf32> to vector<56x24xbf16>
    %c7 = arith.constant 7 : index
    %c0_25 = arith.constant 0 : index
    %c0_26 = arith.constant 0 : index
    %46 = vector.load %arg3[%c7, %c0_25, %c0_26] : memref<9x24x32xbf16, #tpu.memory_space<vmem>>, vector<1x24x32xbf16>
    %47 = vector.shape_cast %46 : vector<1x24x32xbf16> to vector<24x32xbf16>
    %cst_27 = arith.constant dense<0.000000e+00> : vector<56x32xf32>
    %48 = tpu.matmul %45, %47, %cst_27 {dimension_numbers = #tpu.dot_dimension_numbers<[1], [0], [0], [1], [0, 0, 1, 1], [], []>} : vector<56x24xbf16>, vector<24x32xbf16>, vector<56x32xf32> -> vector<56x32xf32>
    %49 = arith.addf %43, %48 : vector<56x32xf32>
    %50 = vector.extract_strided_slice %2 {offsets = [448, 0], sizes = [56, 24], strides = [1, 1]} : vector<504x24xf32> to vector<56x24xf32>
    %51 = arith.truncf %50 : vector<56x24xf32> to vector<56x24xbf16>
    %c8 = arith.constant 8 : index
    %c0_28 = arith.constant 0 : index
    %c0_29 = arith.constant 0 : index
    %52 = vector.load %arg3[%c8, %c0_28, %c0_29] : memref<9x24x32xbf16, #tpu.memory_space<vmem>>, vector<1x24x32xbf16>
    %53 = vector.shape_cast %52 : vector<1x24x32xbf16> to vector<24x32xbf16>
    %cst_30 = arith.constant dense<0.000000e+00> : vector<56x32xf32>
    %54 = tpu.matmul %51, %53, %cst_30 {dimension_numbers = #tpu.dot_dimension_numbers<[1], [0], [0], [1], [0, 0, 1, 1], [], []>} : vector<56x24xbf16>, vector<24x32xbf16>, vector<56x32xf32> -> vector<56x32xf32>
    %55 = arith.addf %49, %54 : vector<56x32xf32>
    %c0_31 = arith.constant 0 : index
    %c0_32 = arith.constant 0 : index
    %56 = vector.load %arg4[%c0_31, %c0_32] : memref<1x32xf32, #tpu.memory_space<vmem>>, vector<1x32xf32>
    %57 = vector.broadcast %56 : vector<1x32xf32> to vector<56x32xf32>
    %58 = arith.addf %55, %57 : vector<56x32xf32>
    %cst_33 = arith.constant 0.000000e+00 : f32
    %59 = vector.broadcast %cst_33 : f32 to vector<56x32xf32>
    %60 = arith.maximumf %58, %59 : vector<56x32xf32>
    %61 = arith.truncf %60 : vector<56x32xf32> to vector<56x32xbf16>
    %c0_34 = arith.constant 0 : index
    %c0_35 = arith.constant 0 : index
    %62 = vector.load %arg5[%c0_34, %c0_35] : memref<144x56xbf16, #tpu.memory_space<vmem>>, vector<144x56xbf16>
    %cst_36 = arith.constant dense<0.000000e+00> : vector<144x32xf32>
    %63 = tpu.matmul %62, %61, %cst_36 {dimension_numbers = #tpu.dot_dimension_numbers<[1], [0], [0], [1], [0, 0, 1, 1], [], []>} : vector<144x56xbf16>, vector<56x32xbf16>, vector<144x32xf32> -> vector<144x32xf32>
    %64 = vector.extract_strided_slice %63 {offsets = [0, 0], sizes = [16, 32], strides = [1, 1]} : vector<144x32xf32> to vector<16x32xf32>
    %65 = arith.truncf %64 : vector<16x32xf32> to vector<16x32xbf16>
    %c0_37 = arith.constant 0 : index
    %c0_38 = arith.constant 0 : index
    %c0_39 = arith.constant 0 : index
    %66 = vector.load %arg6[%c0_37, %c0_38, %c0_39] : memref<9x32x64xbf16, #tpu.memory_space<vmem>>, vector<1x32x64xbf16>
    %67 = vector.shape_cast %66 : vector<1x32x64xbf16> to vector<32x64xbf16>
    %cst_40 = arith.constant dense<0.000000e+00> : vector<16x64xf32>
    %68 = tpu.matmul %65, %67, %cst_40 {dimension_numbers = #tpu.dot_dimension_numbers<[1], [0], [0], [1], [0, 0, 1, 1], [], []>} : vector<16x32xbf16>, vector<32x64xbf16>, vector<16x64xf32> -> vector<16x64xf32>
    %69 = vector.extract_strided_slice %63 {offsets = [16, 0], sizes = [16, 32], strides = [1, 1]} : vector<144x32xf32> to vector<16x32xf32>
    %70 = arith.truncf %69 : vector<16x32xf32> to vector<16x32xbf16>
    %c1_41 = arith.constant 1 : index
    %c0_42 = arith.constant 0 : index
    %c0_43 = arith.constant 0 : index
    %71 = vector.load %arg6[%c1_41, %c0_42, %c0_43] : memref<9x32x64xbf16, #tpu.memory_space<vmem>>, vector<1x32x64xbf16>
    %72 = vector.shape_cast %71 : vector<1x32x64xbf16> to vector<32x64xbf16>
    %cst_44 = arith.constant dense<0.000000e+00> : vector<16x64xf32>
    %73 = tpu.matmul %70, %72, %cst_44 {dimension_numbers = #tpu.dot_dimension_numbers<[1], [0], [0], [1], [0, 0, 1, 1], [], []>} : vector<16x32xbf16>, vector<32x64xbf16>, vector<16x64xf32> -> vector<16x64xf32>
    %74 = arith.addf %68, %73 : vector<16x64xf32>
    %75 = vector.extract_strided_slice %63 {offsets = [32, 0], sizes = [16, 32], strides = [1, 1]} : vector<144x32xf32> to vector<16x32xf32>
    %76 = arith.truncf %75 : vector<16x32xf32> to vector<16x32xbf16>
    %c2_45 = arith.constant 2 : index
    %c0_46 = arith.constant 0 : index
    %c0_47 = arith.constant 0 : index
    %77 = vector.load %arg6[%c2_45, %c0_46, %c0_47] : memref<9x32x64xbf16, #tpu.memory_space<vmem>>, vector<1x32x64xbf16>
    %78 = vector.shape_cast %77 : vector<1x32x64xbf16> to vector<32x64xbf16>
    %cst_48 = arith.constant dense<0.000000e+00> : vector<16x64xf32>
    %79 = tpu.matmul %76, %78, %cst_48 {dimension_numbers = #tpu.dot_dimension_numbers<[1], [0], [0], [1], [0, 0, 1, 1], [], []>} : vector<16x32xbf16>, vector<32x64xbf16>, vector<16x64xf32> -> vector<16x64xf32>
    %80 = arith.addf %74, %79 : vector<16x64xf32>
    %81 = vector.extract_strided_slice %63 {offsets = [48, 0], sizes = [16, 32], strides = [1, 1]} : vector<144x32xf32> to vector<16x32xf32>
    %82 = arith.truncf %81 : vector<16x32xf32> to vector<16x32xbf16>
    %c3_49 = arith.constant 3 : index
    %c0_50 = arith.constant 0 : index
    %c0_51 = arith.constant 0 : index
    %83 = vector.load %arg6[%c3_49, %c0_50, %c0_51] : memref<9x32x64xbf16, #tpu.memory_space<vmem>>, vector<1x32x64xbf16>
    %84 = vector.shape_cast %83 : vector<1x32x64xbf16> to vector<32x64xbf16>
    %cst_52 = arith.constant dense<0.000000e+00> : vector<16x64xf32>
    %85 = tpu.matmul %82, %84, %cst_52 {dimension_numbers = #tpu.dot_dimension_numbers<[1], [0], [0], [1], [0, 0, 1, 1], [], []>} : vector<16x32xbf16>, vector<32x64xbf16>, vector<16x64xf32> -> vector<16x64xf32>
    %86 = arith.addf %80, %85 : vector<16x64xf32>
    %87 = vector.extract_strided_slice %63 {offsets = [64, 0], sizes = [16, 32], strides = [1, 1]} : vector<144x32xf32> to vector<16x32xf32>
    %88 = arith.truncf %87 : vector<16x32xf32> to vector<16x32xbf16>
    %c4_53 = arith.constant 4 : index
    %c0_54 = arith.constant 0 : index
    %c0_55 = arith.constant 0 : index
    %89 = vector.load %arg6[%c4_53, %c0_54, %c0_55] : memref<9x32x64xbf16, #tpu.memory_space<vmem>>, vector<1x32x64xbf16>
    %90 = vector.shape_cast %89 : vector<1x32x64xbf16> to vector<32x64xbf16>
    %cst_56 = arith.constant dense<0.000000e+00> : vector<16x64xf32>
    %91 = tpu.matmul %88, %90, %cst_56 {dimension_numbers = #tpu.dot_dimension_numbers<[1], [0], [0], [1], [0, 0, 1, 1], [], []>} : vector<16x32xbf16>, vector<32x64xbf16>, vector<16x64xf32> -> vector<16x64xf32>
    %92 = arith.addf %86, %91 : vector<16x64xf32>
    %93 = vector.extract_strided_slice %63 {offsets = [80, 0], sizes = [16, 32], strides = [1, 1]} : vector<144x32xf32> to vector<16x32xf32>
    %94 = arith.truncf %93 : vector<16x32xf32> to vector<16x32xbf16>
    %c5_57 = arith.constant 5 : index
    %c0_58 = arith.constant 0 : index
    %c0_59 = arith.constant 0 : index
    %95 = vector.load %arg6[%c5_57, %c0_58, %c0_59] : memref<9x32x64xbf16, #tpu.memory_space<vmem>>, vector<1x32x64xbf16>
    %96 = vector.shape_cast %95 : vector<1x32x64xbf16> to vector<32x64xbf16>
    %cst_60 = arith.constant dense<0.000000e+00> : vector<16x64xf32>
    %97 = tpu.matmul %94, %96, %cst_60 {dimension_numbers = #tpu.dot_dimension_numbers<[1], [0], [0], [1], [0, 0, 1, 1], [], []>} : vector<16x32xbf16>, vector<32x64xbf16>, vector<16x64xf32> -> vector<16x64xf32>
    %98 = arith.addf %92, %97 : vector<16x64xf32>
    %99 = vector.extract_strided_slice %63 {offsets = [96, 0], sizes = [16, 32], strides = [1, 1]} : vector<144x32xf32> to vector<16x32xf32>
    %100 = arith.truncf %99 : vector<16x32xf32> to vector<16x32xbf16>
    %c6_61 = arith.constant 6 : index
    %c0_62 = arith.constant 0 : index
    %c0_63 = arith.constant 0 : index
    %101 = vector.load %arg6[%c6_61, %c0_62, %c0_63] : memref<9x32x64xbf16, #tpu.memory_space<vmem>>, vector<1x32x64xbf16>
    %102 = vector.shape_cast %101 : vector<1x32x64xbf16> to vector<32x64xbf16>
    %cst_64 = arith.constant dense<0.000000e+00> : vector<16x64xf32>
    %103 = tpu.matmul %100, %102, %cst_64 {dimension_numbers = #tpu.dot_dimension_numbers<[1], [0], [0], [1], [0, 0, 1, 1], [], []>} : vector<16x32xbf16>, vector<32x64xbf16>, vector<16x64xf32> -> vector<16x64xf32>
    %104 = arith.addf %98, %103 : vector<16x64xf32>
    %105 = vector.extract_strided_slice %63 {offsets = [112, 0], sizes = [16, 32], strides = [1, 1]} : vector<144x32xf32> to vector<16x32xf32>
    %106 = arith.truncf %105 : vector<16x32xf32> to vector<16x32xbf16>
    %c7_65 = arith.constant 7 : index
    %c0_66 = arith.constant 0 : index
    %c0_67 = arith.constant 0 : index
    %107 = vector.load %arg6[%c7_65, %c0_66, %c0_67] : memref<9x32x64xbf16, #tpu.memory_space<vmem>>, vector<1x32x64xbf16>
    %108 = vector.shape_cast %107 : vector<1x32x64xbf16> to vector<32x64xbf16>
    %cst_68 = arith.constant dense<0.000000e+00> : vector<16x64xf32>
    %109 = tpu.matmul %106, %108, %cst_68 {dimension_numbers = #tpu.dot_dimension_numbers<[1], [0], [0], [1], [0, 0, 1, 1], [], []>} : vector<16x32xbf16>, vector<32x64xbf16>, vector<16x64xf32> -> vector<16x64xf32>
    %110 = arith.addf %104, %109 : vector<16x64xf32>
    %111 = vector.extract_strided_slice %63 {offsets = [128, 0], sizes = [16, 32], strides = [1, 1]} : vector<144x32xf32> to vector<16x32xf32>
    %112 = arith.truncf %111 : vector<16x32xf32> to vector<16x32xbf16>
    %c8_69 = arith.constant 8 : index
    %c0_70 = arith.constant 0 : index
    %c0_71 = arith.constant 0 : index
    %113 = vector.load %arg6[%c8_69, %c0_70, %c0_71] : memref<9x32x64xbf16, #tpu.memory_space<vmem>>, vector<1x32x64xbf16>
    %114 = vector.shape_cast %113 : vector<1x32x64xbf16> to vector<32x64xbf16>
    %cst_72 = arith.constant dense<0.000000e+00> : vector<16x64xf32>
    %115 = tpu.matmul %112, %114, %cst_72 {dimension_numbers = #tpu.dot_dimension_numbers<[1], [0], [0], [1], [0, 0, 1, 1], [], []>} : vector<16x32xbf16>, vector<32x64xbf16>, vector<16x64xf32> -> vector<16x64xf32>
    %116 = arith.addf %110, %115 : vector<16x64xf32>
    %c0_73 = arith.constant 0 : index
    %c0_74 = arith.constant 0 : index
    %117 = vector.load %arg7[%c0_73, %c0_74] : memref<1x64xf32, #tpu.memory_space<vmem>>, vector<1x64xf32>
    %118 = vector.broadcast %117 : vector<1x64xf32> to vector<16x64xf32>
    %119 = arith.addf %116, %118 : vector<16x64xf32>
    %cst_75 = arith.constant 0.000000e+00 : f32
    %120 = vector.broadcast %cst_75 : f32 to vector<16x64xf32>
    %121 = arith.maximumf %119, %120 : vector<16x64xf32>
    %122 = arith.truncf %121 : vector<16x64xf32> to vector<16x64xbf16>
    %c0_76 = arith.constant 0 : index
    %c0_77 = arith.constant 0 : index
    %123 = vector.load %arg8[%c0_76, %c0_77] : memref<72x16xbf16, #tpu.memory_space<vmem>>, vector<72x16xbf16>
    %cst_78 = arith.constant dense<0.000000e+00> : vector<72x64xf32>
    %124 = tpu.matmul %123, %122, %cst_78 {dimension_numbers = #tpu.dot_dimension_numbers<[1], [0], [0], [1], [0, 0, 1, 1], [], []>} : vector<72x16xbf16>, vector<16x64xbf16>, vector<72x64xf32> -> vector<72x64xf32>
    %125 = vector.extract_strided_slice %124 {offsets = [0, 0], sizes = [8, 64], strides = [1, 1]} : vector<72x64xf32> to vector<8x64xf32>
    %126 = arith.truncf %125 : vector<8x64xf32> to vector<8x64xbf16>
    %c0_79 = arith.constant 0 : index
    %c0_80 = arith.constant 0 : index
    %c0_81 = arith.constant 0 : index
    %127 = vector.load %arg9[%c0_79, %c0_80, %c0_81] : memref<9x64x128xbf16, #tpu.memory_space<vmem>>, vector<1x64x128xbf16>
    %128 = vector.shape_cast %127 : vector<1x64x128xbf16> to vector<64x128xbf16>
    %cst_82 = arith.constant dense<0.000000e+00> : vector<8x128xf32>
    %129 = tpu.matmul %126, %128, %cst_82 {dimension_numbers = #tpu.dot_dimension_numbers<[1], [0], [0], [1], [0, 0, 1, 1], [], []>} : vector<8x64xbf16>, vector<64x128xbf16>, vector<8x128xf32> -> vector<8x128xf32>
    %130 = vector.extract_strided_slice %124 {offsets = [8, 0], sizes = [8, 64], strides = [1, 1]} : vector<72x64xf32> to vector<8x64xf32>
    %131 = arith.truncf %130 : vector<8x64xf32> to vector<8x64xbf16>
    %c1_83 = arith.constant 1 : index
    %c0_84 = arith.constant 0 : index
    %c0_85 = arith.constant 0 : index
    %132 = vector.load %arg9[%c1_83, %c0_84, %c0_85] : memref<9x64x128xbf16, #tpu.memory_space<vmem>>, vector<1x64x128xbf16>
    %133 = vector.shape_cast %132 : vector<1x64x128xbf16> to vector<64x128xbf16>
    %cst_86 = arith.constant dense<0.000000e+00> : vector<8x128xf32>
    %134 = tpu.matmul %131, %133, %cst_86 {dimension_numbers = #tpu.dot_dimension_numbers<[1], [0], [0], [1], [0, 0, 1, 1], [], []>} : vector<8x64xbf16>, vector<64x128xbf16>, vector<8x128xf32> -> vector<8x128xf32>
    %135 = arith.addf %129, %134 : vector<8x128xf32>
    %136 = vector.extract_strided_slice %124 {offsets = [16, 0], sizes = [8, 64], strides = [1, 1]} : vector<72x64xf32> to vector<8x64xf32>
    %137 = arith.truncf %136 : vector<8x64xf32> to vector<8x64xbf16>
    %c2_87 = arith.constant 2 : index
    %c0_88 = arith.constant 0 : index
    %c0_89 = arith.constant 0 : index
    %138 = vector.load %arg9[%c2_87, %c0_88, %c0_89] : memref<9x64x128xbf16, #tpu.memory_space<vmem>>, vector<1x64x128xbf16>
    %139 = vector.shape_cast %138 : vector<1x64x128xbf16> to vector<64x128xbf16>
    %cst_90 = arith.constant dense<0.000000e+00> : vector<8x128xf32>
    %140 = tpu.matmul %137, %139, %cst_90 {dimension_numbers = #tpu.dot_dimension_numbers<[1], [0], [0], [1], [0, 0, 1, 1], [], []>} : vector<8x64xbf16>, vector<64x128xbf16>, vector<8x128xf32> -> vector<8x128xf32>
    %141 = arith.addf %135, %140 : vector<8x128xf32>
    %142 = vector.extract_strided_slice %124 {offsets = [24, 0], sizes = [8, 64], strides = [1, 1]} : vector<72x64xf32> to vector<8x64xf32>
    %143 = arith.truncf %142 : vector<8x64xf32> to vector<8x64xbf16>
    %c3_91 = arith.constant 3 : index
    %c0_92 = arith.constant 0 : index
    %c0_93 = arith.constant 0 : index
    %144 = vector.load %arg9[%c3_91, %c0_92, %c0_93] : memref<9x64x128xbf16, #tpu.memory_space<vmem>>, vector<1x64x128xbf16>
    %145 = vector.shape_cast %144 : vector<1x64x128xbf16> to vector<64x128xbf16>
    %cst_94 = arith.constant dense<0.000000e+00> : vector<8x128xf32>
    %146 = tpu.matmul %143, %145, %cst_94 {dimension_numbers = #tpu.dot_dimension_numbers<[1], [0], [0], [1], [0, 0, 1, 1], [], []>} : vector<8x64xbf16>, vector<64x128xbf16>, vector<8x128xf32> -> vector<8x128xf32>
    %147 = arith.addf %141, %146 : vector<8x128xf32>
    %148 = vector.extract_strided_slice %124 {offsets = [32, 0], sizes = [8, 64], strides = [1, 1]} : vector<72x64xf32> to vector<8x64xf32>
    %149 = arith.truncf %148 : vector<8x64xf32> to vector<8x64xbf16>
    %c4_95 = arith.constant 4 : index
    %c0_96 = arith.constant 0 : index
    %c0_97 = arith.constant 0 : index
    %150 = vector.load %arg9[%c4_95, %c0_96, %c0_97] : memref<9x64x128xbf16, #tpu.memory_space<vmem>>, vector<1x64x128xbf16>
    %151 = vector.shape_cast %150 : vector<1x64x128xbf16> to vector<64x128xbf16>
    %cst_98 = arith.constant dense<0.000000e+00> : vector<8x128xf32>
    %152 = tpu.matmul %149, %151, %cst_98 {dimension_numbers = #tpu.dot_dimension_numbers<[1], [0], [0], [1], [0, 0, 1, 1], [], []>} : vector<8x64xbf16>, vector<64x128xbf16>, vector<8x128xf32> -> vector<8x128xf32>
    %153 = arith.addf %147, %152 : vector<8x128xf32>
    %154 = vector.extract_strided_slice %124 {offsets = [40, 0], sizes = [8, 64], strides = [1, 1]} : vector<72x64xf32> to vector<8x64xf32>
    %155 = arith.truncf %154 : vector<8x64xf32> to vector<8x64xbf16>
    %c5_99 = arith.constant 5 : index
    %c0_100 = arith.constant 0 : index
    %c0_101 = arith.constant 0 : index
    %156 = vector.load %arg9[%c5_99, %c0_100, %c0_101] : memref<9x64x128xbf16, #tpu.memory_space<vmem>>, vector<1x64x128xbf16>
    %157 = vector.shape_cast %156 : vector<1x64x128xbf16> to vector<64x128xbf16>
    %cst_102 = arith.constant dense<0.000000e+00> : vector<8x128xf32>
    %158 = tpu.matmul %155, %157, %cst_102 {dimension_numbers = #tpu.dot_dimension_numbers<[1], [0], [0], [1], [0, 0, 1, 1], [], []>} : vector<8x64xbf16>, vector<64x128xbf16>, vector<8x128xf32> -> vector<8x128xf32>
    %159 = arith.addf %153, %158 : vector<8x128xf32>
    %160 = vector.extract_strided_slice %124 {offsets = [48, 0], sizes = [8, 64], strides = [1, 1]} : vector<72x64xf32> to vector<8x64xf32>
    %161 = arith.truncf %160 : vector<8x64xf32> to vector<8x64xbf16>
    %c6_103 = arith.constant 6 : index
    %c0_104 = arith.constant 0 : index
    %c0_105 = arith.constant 0 : index
    %162 = vector.load %arg9[%c6_103, %c0_104, %c0_105] : memref<9x64x128xbf16, #tpu.memory_space<vmem>>, vector<1x64x128xbf16>
    %163 = vector.shape_cast %162 : vector<1x64x128xbf16> to vector<64x128xbf16>
    %cst_106 = arith.constant dense<0.000000e+00> : vector<8x128xf32>
    %164 = tpu.matmul %161, %163, %cst_106 {dimension_numbers = #tpu.dot_dimension_numbers<[1], [0], [0], [1], [0, 0, 1, 1], [], []>} : vector<8x64xbf16>, vector<64x128xbf16>, vector<8x128xf32> -> vector<8x128xf32>
    %165 = arith.addf %159, %164 : vector<8x128xf32>
    %166 = vector.extract_strided_slice %124 {offsets = [56, 0], sizes = [8, 64], strides = [1, 1]} : vector<72x64xf32> to vector<8x64xf32>
    %167 = arith.truncf %166 : vector<8x64xf32> to vector<8x64xbf16>
    %c7_107 = arith.constant 7 : index
    %c0_108 = arith.constant 0 : index
    %c0_109 = arith.constant 0 : index
    %168 = vector.load %arg9[%c7_107, %c0_108, %c0_109] : memref<9x64x128xbf16, #tpu.memory_space<vmem>>, vector<1x64x128xbf16>
    %169 = vector.shape_cast %168 : vector<1x64x128xbf16> to vector<64x128xbf16>
    %cst_110 = arith.constant dense<0.000000e+00> : vector<8x128xf32>
    %170 = tpu.matmul %167, %169, %cst_110 {dimension_numbers = #tpu.dot_dimension_numbers<[1], [0], [0], [1], [0, 0, 1, 1], [], []>} : vector<8x64xbf16>, vector<64x128xbf16>, vector<8x128xf32> -> vector<8x128xf32>
    %171 = arith.addf %165, %170 : vector<8x128xf32>
    %172 = vector.extract_strided_slice %124 {offsets = [64, 0], sizes = [8, 64], strides = [1, 1]} : vector<72x64xf32> to vector<8x64xf32>
    %173 = arith.truncf %172 : vector<8x64xf32> to vector<8x64xbf16>
    %c8_111 = arith.constant 8 : index
    %c0_112 = arith.constant 0 : index
    %c0_113 = arith.constant 0 : index
    %174 = vector.load %arg9[%c8_111, %c0_112, %c0_113] : memref<9x64x128xbf16, #tpu.memory_space<vmem>>, vector<1x64x128xbf16>
    %175 = vector.shape_cast %174 : vector<1x64x128xbf16> to vector<64x128xbf16>
    %cst_114 = arith.constant dense<0.000000e+00> : vector<8x128xf32>
    %176 = tpu.matmul %173, %175, %cst_114 {dimension_numbers = #tpu.dot_dimension_numbers<[1], [0], [0], [1], [0, 0, 1, 1], [], []>} : vector<8x64xbf16>, vector<64x128xbf16>, vector<8x128xf32> -> vector<8x128xf32>
    %177 = arith.addf %171, %176 : vector<8x128xf32>
    %c0_115 = arith.constant 0 : index
    %c0_116 = arith.constant 0 : index
    %178 = vector.load %arg10[%c0_115, %c0_116] : memref<1x128xf32, #tpu.memory_space<vmem>>, vector<1x128xf32>
    %179 = vector.broadcast %178 : vector<1x128xf32> to vector<8x128xf32>
    %180 = arith.addf %177, %179 : vector<8x128xf32>
    %cst_117 = arith.constant 0.000000e+00 : f32
    %181 = vector.broadcast %cst_117 : f32 to vector<8x128xf32>
    %182 = arith.maximumf %180, %181 : vector<8x128xf32>
    %183 = arith.truncf %182 : vector<8x128xf32> to vector<8x128xbf16>
    %c0_118 = arith.constant 0 : index
    %c0_119 = arith.constant 0 : index
    %184 = vector.load %arg12[%c0_118, %c0_119] : memref<1x8xf32, #tpu.memory_space<vmem>>, vector<1x8xf32>
    %185 = vector.extract_strided_slice %183 {offsets = [0, 0], sizes = [1, 128], strides = [1, 1]} : vector<8x128xbf16> to vector<1x128xbf16>
    %c0_120 = arith.constant 0 : index
    %c0_121 = arith.constant 0 : index
    %c0_122 = arith.constant 0 : index
    %186 = vector.load %arg11[%c0_120, %c0_121, %c0_122] : memref<1x128x8xbf16, #tpu.memory_space<vmem>>, vector<1x128x8xbf16>
    %187 = vector.shape_cast %186 : vector<1x128x8xbf16> to vector<128x8xbf16>
    %cst_123 = arith.constant dense<0.000000e+00> : vector<1x8xf32>
    %188 = tpu.matmul %185, %187, %cst_123 {dimension_numbers = #tpu.dot_dimension_numbers<[1], [0], [0], [1], [0, 0, 1, 1], [], []>} : vector<1x128xbf16>, vector<128x8xbf16>, vector<1x8xf32> -> vector<1x8xf32>
    %189 = arith.addf %184, %188 : vector<1x8xf32>
    %c0_124 = arith.constant 0 : index
    %c0_125 = arith.constant 0 : index
    %190 = vector.load %arg13[%c0_124, %c0_125] : memref<1x8xf32, #tpu.memory_space<vmem>>, vector<1x8xf32>
    tpu.vector_store %arg13[%c0_124, %c0_125], %189 {strides = array<i32>} : memref<1x8xf32, #tpu.memory_space<vmem>>, vector<1x8xf32>,
    return
  }
  func.func @transform_0(%arg0: i32) -> (i32, i32) {
    %c0_i32 = arith.constant 0 : i32
    %c0_i32_0 = arith.constant 0 : i32
    %c0_i32_1 = arith.constant 0 : i32
    return %c0_i32, %c0_i32_0 : i32, i32
  }
  func.func @transform_1(%arg0: i32) -> (i32, i32) {
    %c0_i32 = arith.constant 0 : i32
    %c0_i32_0 = arith.constant 0 : i32
    %c0_i32_1 = arith.constant 0 : i32
    return %c0_i32, %c0_i32_0 : i32, i32
  }
  func.func @transform_2(%arg0: i32) -> (i32, i32, i32) {
    %c0_i32 = arith.constant 0 : i32
    %c0_i32_0 = arith.constant 0 : i32
    %c0_i32_1 = arith.constant 0 : i32
    %c0_i32_2 = arith.constant 0 : i32
    return %c0_i32, %c0_i32_0, %c0_i32_1 : i32, i32, i32
  }
  func.func @transform_3(%arg0: i32) -> (i32, i32) {
    %c0_i32 = arith.constant 0 : i32
    %c0_i32_0 = arith.constant 0 : i32
    %c0_i32_1 = arith.constant 0 : i32
    return %c0_i32, %c0_i32_0 : i32, i32
  }
  func.func @transform_4(%arg0: i32) -> (i32, i32) {
    %c0_i32 = arith.constant 0 : i32
    %c0_i32_0 = arith.constant 0 : i32
    %c0_i32_1 = arith.constant 0 : i32
    return %c0_i32, %c0_i32_0 : i32, i32
  }
  func.func @transform_5(%arg0: i32) -> (i32, i32, i32) {
    %c0_i32 = arith.constant 0 : i32
    %c0_i32_0 = arith.constant 0 : i32
    %c0_i32_1 = arith.constant 0 : i32
    %c0_i32_2 = arith.constant 0 : i32
    return %c0_i32, %c0_i32_0, %c0_i32_1 : i32, i32, i32
  }
  func.func @transform_6(%arg0: i32) -> (i32, i32) {
    %c0_i32 = arith.constant 0 : i32
    %c0_i32_0 = arith.constant 0 : i32
    %c0_i32_1 = arith.constant 0 : i32
    return %c0_i32, %c0_i32_0 : i32, i32
  }
  func.func @transform_7(%arg0: i32) -> (i32, i32) {
    %c0_i32 = arith.constant 0 : i32
    %c0_i32_0 = arith.constant 0 : i32
    %c0_i32_1 = arith.constant 0 : i32
    return %c0_i32, %c0_i32_0 : i32, i32
  }
  func.func @transform_8(%arg0: i32) -> (i32, i32, i32) {
    %c0_i32 = arith.constant 0 : i32
    %c0_i32_0 = arith.constant 0 : i32
    %c0_i32_1 = arith.constant 0 : i32
    %c0_i32_2 = arith.constant 0 : i32
    return %c0_i32, %c0_i32_0, %c0_i32_1 : i32, i32, i32
  }
  func.func @transform_9(%arg0: i32) -> (i32, i32) {
    %c0_i32 = arith.constant 0 : i32
    %c0_i32_0 = arith.constant 0 : i32
    %c0_i32_1 = arith.constant 0 : i32
    return %c0_i32, %c0_i32_0 : i32, i32
  }
  func.func @transform_10(%arg0: i32) -> (i32, i32, i32) {
    %c0_i32 = arith.constant 0 : i32
    %c0_i32_0 = arith.constant 0 : i32
    %c0_i32_1 = arith.constant 0 : i32
    %c0_i32_2 = arith.constant 0 : i32
    return %c0_i32, %c0_i32_0, %c0_i32_1 : i32, i32, i32
  }
  func.func @transform_11(%arg0: i32) -> (i32, i32) {
    %c0_i32 = arith.constant 0 : i32
    %c0_i32_0 = arith.constant 0 : i32
    %c0_i32_1 = arith.constant 0 : i32
    return %c0_i32, %c0_i32_0 : i32, i32
  }
  func.func @transform_12(%arg0: i32) -> (i32, i32) {
    %c0_i32 = arith.constant 0 : i32
    %c0_i32_0 = arith.constant 0 : i32
    %c0_i32_1 = arith.constant 0 : i32
    return %c0_i32, %c0_i32_0 : i32, i32
  }
}

</mosaic_0001>

<bundles_post_ra>
// kernel: dqn_forward.1
= control target key start
LH: loop header
LB: loop body
LE: loop exit
PB: predicated region body
PF: predicated region fallthrough
CT: control target
= control target key end

     0   :  { %17 = vsyncpa [#allocation3], 0  ;;  %s3637_s24 = smov [#allocation2]   ;;  %s3638_s26 = smov 64   ;;  %s4543_s0 = inlined_call_operand.vmem [shape: bf16[256,24], index: 0, kind: input, shape index: {}]   ;;  %s4544_s1 = inlined_call_operand.vmem [shape: bf16[504,256], index: 1, kind: input, shape index: {}]   ;;  %s4545_s2 = inlined_call_operand.hbm [shape: bf16[9,24,32], index: 2, kind: input, shape index: {}]   ;;  %s4546_s3 = inlined_call_operand.vmem [shape: f32[1,32], index: 3, kind: input, shape index: {}]   ;;  %s4547_s4 = inlined_call_operand.vmem [shape: bf16[144,56], index: 4, kind: input, shape index: {}]   ;;  %s4548_s5 = inlined_call_operand.vmem [shape: bf16[9,32,64], index: 5, kind: input, shape index: {}]   ;;  %s4549_s6 = inlined_call_operand.vmem [shape: f32[1,64], index: 6, kind: input, shape index: {}]   ;;  %s4550_s7 = inlined_call_operand.vmem [shape: bf16[72,16], index: 7, kind: input, shape index: {}]   ;;  %s4551_s8 = inlined_call_operand.vmem [shape: bf16[9,64,128], index: 8, kind: input, shape index: {}]   ;;  %s4552_s9 = inlined_call_operand.vmem [shape: f32[1,128], index: 9, kind: input, shape index: {}]   ;;  %s4553_s10 = inlined_call_operand.vmem [shape: bf16[1,128,8], index: 10, kind: input, shape index: {}]   ;;  %s4554_s11 = inlined_call_operand.vmem [shape: f32[1,8], index: 11, kind: input, shape index: {}]   ;;  %s4555_s12 = inlined_call_operand.vmem [shape: f32[1,8], index: 12, kind: output, shape index: {}]  }
   0x1   :  { %s26_s23 = sshll.u32 %s4545_s2, 4  ;;  %s28_s25 = sshll.u32 %s3637_s24, 4  ;;  %s27_s23 = int_to_ptr.hbm [resolvable:$true] %s26_s23  ;;  %s29_s25 = int_to_ptr.vmem [resolvable:$true] %s28_s25 }
   0x2   :  { %s3639_s27 = smov 4  }
   0x3   :  { %34 = dma.hbm_to_vmem [thread:$0]  %s27_s23, 1728, %s29_s25, [#allocation3], %s3638_s26, %s3638_s26, %s3639_s27  }
   0x4   :  { %3635 = dma.done.wait [#allocation3], 1728  }
   0x5   :  { %3636 = vsyncadd [#allocation3], 4294965568  ;;  %v3450_v0 = vld [vmem:[%s4543_s0 + $0x38] sm:$0xff]  ;;  %v3449_v2 = vld [vmem:[%s4543_s0 + $0x30] sm:$0xff]  ;;  %vm939_vm0 = vcmask 1043456   ;;  %vm926_vm1 = vcmask 195584  }
   0x6   :  { %v3458_v1 = vld [vmem:[%s4543_s0 + $0x78] sm:$0xff]  ;;  %566 = vmatpush.bf16.msra.mxu0 %v3450_v0  ;;  %v3457_v3 = vld [vmem:[%s4543_s0 + $0x70] sm:$0xff]  ;;  %v3448_v4 = vld [vmem:[%s4543_s0 + $0x28] sm:$0xff]  ;;  %vm1577_vm2 = vcmask 457728   ;;  %vm1685_vm3 = vcmask 261120   ;;  %vm2032_vm4 = vcmask 130048  }
   0x7   :  { %734 = vmatpush.bf16.msra.mxu1 %v3458_v1  ;;  %v3456_v5 = vld [vmem:[%s4543_s0 + $0x68] sm:$0xff]  ;;  %v3447_v6 = vld [vmem:[%s4543_s0 + $0x20] sm:$0xff]  ;;  %v3446_v8 = vld [vmem:[%s4543_s0 + $0x18] sm:$0xff]  ;;  %vm2124_vm5 = vcmask 523264   ;;  %vm2624_vm6 = vcmask 57344  }
   0x8   :  { %v3455_v7 = vld [vmem:[%s4543_s0 + $0x60] sm:$0xff]  ;;  %v3454_v9 = vld [vmem:[%s4543_s0 + $0x58] sm:$0xff]  ;;  %v3445_v10 = vld [vmem:[%s4543_s0 + $0x10] sm:$0xff] }
   0x9   :  { %v3453_v11 = vld [vmem:[%s4543_s0 + $0x50] sm:$0xff]  ;;  %v3444_v12 = vld [vmem:[%s4543_s0 + $0x8] sm:$0xff]  ;;  %v3443_v14 = vld [vmem:[%s4543_s0] sm:$0xff] }
   0xa   :  { %567 = vmatpush.bf16.msra.mxu0 %v3449_v2  ;;  %v3452_v13 = vld [vmem:[%s4543_s0 + $0x48] sm:$0xff]  ;;  %v3451_v15 = vld [vmem:[%s4543_s0 + $0x40] sm:$0xff]  ;;  %v2641_v22 = vld [vmem:[%s4544_s1 + $0x10] sm:$0xf] }
   0xb   :  { %735 = vmatpush.bf16.msra.mxu1 %v3457_v3  ;;  %v2633_v16 = vld [vmem:[%s4544_s1] sm:$0xf]  ;;  %v3460_v17 = vld [vmem:[%s4544_s1 + $0x4] sm:$0xf0]  ;;  %v3459_v18 = vld [vmem:[%s4544_s1 + $0x4] sm:$0xf] }
   0xc   :  { %v2635_v19 = vld [vmem:[%s4544_s1 + $0x8] sm:$0xf0]  ;;  %v2634_v20 = vor.u32 %v3460_v17, %v2633_v16  ;;  %v3462_v23 = vld [vmem:[%s4544_s1 + $0x14] sm:$0xf0]  ;;  %v3461_v24 = vld [vmem:[%s4544_s1 + $0x14] sm:$0xf] }
   0xd   :  { %v2638_v21 = vor.u32 %v3459_v18, %v2635_v19  ;;  %v2643_v25 = vld [vmem:[%s4544_s1 + $0x18] sm:$0xf0]  ;;  %v2642_v26 = vor.u32 %v3462_v23, %v2641_v22  ;;  %v2649_v28 = vld [vmem:[%s4544_s1 + $0x20] sm:$0xf]  ;;  %v3464_v29 = vld [vmem:[%s4544_s1 + $0x24] sm:$0xf0] }
   0xe   :  { %568 = vmatpush.bf16.msra.mxu0 %v3448_v4  ;;  %v2646_v27 = vor.u32 %v3461_v24, %v2643_v25  ;;  %v3463_v30 = vld [vmem:[%s4544_s1 + $0x24] sm:$0xf]  ;;  %v2651_v31 = vld [vmem:[%s4544_s1 + $0x28] sm:$0xf0]  ;;  %v2650_v32 = vor.u32 %v3464_v29, %v2649_v28  ;;  %v2657_v34 = vld [vmem:[%s4544_s1 + $0x30] sm:$0xf] }
   0xf   :  { %736 = vmatpush.bf16.msra.mxu1 %v3456_v5  ;;  %v2654_v33 = vor.u32 %v3463_v30, %v2651_v31  ;;  %v3466_v35 = vld [vmem:[%s4544_s1 + $0x34] sm:$0xf0]  ;;  %v3465_v36 = vld [vmem:[%s4544_s1 + $0x34] sm:$0xf]  ;;  %v2659_v37 = vld [vmem:[%s4544_s1 + $0x38] sm:$0xf0] }
  0x10   :  { %v2658_v38 = vor.u32 %v3466_v35, %v2657_v34  ;;  %v2662_v39 = vor.u32 %v3465_v36, %v2659_v37  ;;  %v2665_v40 = vld [vmem:[%s4544_s1 + $0x40] sm:$0xf]  ;;  %v3468_v41 = vld [vmem:[%s4544_s1 + $0x44] sm:$0xf0]  ;;  %v3467_v42 = vld [vmem:[%s4544_s1 + $0x44] sm:$0xf] }
  0x11   :  { %v2667_v43 = vld [vmem:[%s4544_s1 + $0x48] sm:$0xf0]  ;;  %v2666_v44 = vor.u32 %v3468_v41, %v2665_v40  ;;  %v2673_v46 = vld [vmem:[%s4544_s1 + $0x50] sm:$0xf]  ;;  %v3470_v47 = vld [vmem:[%s4544_s1 + $0x54] sm:$0xf0] }
  0x12   :  { %569 = vmatpush.bf16.msra.mxu0 %v3447_v6  ;;  %v2670_v45 = vor.u32 %v3467_v42, %v2667_v43  ;;  %v3469_v48 = vld [vmem:[%s4544_s1 + $0x54] sm:$0xf]  ;;  %v2675_v49 = vld [vmem:[%s4544_s1 + $0x58] sm:$0xf0]  ;;  %v2674_v50 = vor.u32 %v3470_v47, %v2673_v46  ;;  %v2681_v52 = vld [vmem:[%s4544_s1 + $0x60] sm:$0xf] }
  0x13   :  { %737 = vmatpush.bf16.msra.mxu1 %v3455_v7  ;;  %v2678_v51 = vor.u32 %v3469_v48, %v2675_v49  ;;  %v3472_v53 = vld [vmem:[%s4544_s1 + $0x64] sm:$0xf0]  ;;  %v3471_v54 = vld [vmem:[%s4544_s1 + $0x64] sm:$0xf]  ;;  %v2683_v55 = vld [vmem:[%s4544_s1 + $0x68] sm:$0xf0] }
  0x14   :  { %v2682_v56 = vor.u32 %v3472_v53, %v2681_v52  ;;  %v2686_v57 = vor.u32 %v3471_v54, %v2683_v55  ;;  %v908_v58 = vld [vmem:[#allocation2 + $0x8] sm:$0xf]  ;;  %v3521_v62 = vld [vmem:[#allocation2] sm:$0xff]  ;;  %v2689_v63 = vld [vmem:[%s4544_s1 + $0x70] sm:$0xf] }
  0x15   :  { %v976_v59 = vunpack.c.l.b16 %v908_v58  ;;  %v3474_v0 = vld [vmem:[%s4544_s1 + $0x74] sm:$0xf0]  ;;  %v3473_v1 = vld [vmem:[%s4544_s1 + $0x74] sm:$0xf]  ;;  %v2691_v2 = vld [vmem:[%s4544_s1 + $0x78] sm:$0xf0] }
  0x16   :  { %570 = vmatpush.bf16.msra.mxu0 %v3446_v8  ;;  %v2690_v3 = vor.u32 %v3474_v0, %v2689_v63  ;;  %v2694_v4 = vor.u32 %v3473_v1, %v2691_v2  ;;  %v2697_v5 = vld [vmem:[%s4544_s1 + $0x80] sm:$0xf]  ;;  %v3476_v6 = vld [vmem:[%s4544_s1 + $0x84] sm:$0xf0]  ;;  %v3475_v7 = vld [vmem:[%s4544_s1 + $0x84] sm:$0xf] }
  0x17   :  { %738 = vmatpush.bf16.msra.mxu1 %v3454_v9  ;;  %v978_v60 = vpack.c.b16 %v976_v59, %v976_v59  ;;  %v2699_v8 = vld [vmem:[%s4544_s1 + $0x88] sm:$0xf0]  ;;  %v2698_v9 = vor.u32 %v3476_v6, %v2697_v5  ;;  %v2705_v18 = vld [vmem:[%s4544_s1 + $0x90] sm:$0xf]  ;;  %v3478_v19 = vld [vmem:[%s4544_s1 + $0x94] sm:$0xf0] }
  0x18   :  { %v2706_v22 = vor.u32 %v3478_v19, %v2705_v18  ;;  %v916_v28 = vld [vmem:[#allocation2 + $0x14] sm:$0xf]  ;;  %v3480_v35 = vld [vmem:[%s4544_s1 + $0xa4] sm:$0xf0]  ;;  %v3479_v36 = vld [vmem:[%s4544_s1 + $0xa4] sm:$0xf] }
  0x19   :  { %v993_v61 = vsel %vm939_vm0, %v978_v60, 0  ;;  %v922_v31 = vunpack.c.l.b16 %v916_v28  ;;  %v2715_v37 = vld [vmem:[%s4544_s1 + $0xa8] sm:$0xf0]  ;;  %v2721_v49 = vld [vmem:[%s4544_s1 + $0xb0] sm:$0xf] }
  0x1a   :  { %571 = vmatpush.bf16.msra.mxu0 %v3445_v10  ;;  %1001 = vmatpush.bf16.msra.mxu3 %v993_v61  ;;  %v2702_v10 = vor.u32 %v3475_v7, %v2699_v8  ;;  %v2718_v40 = vor.u32 %v3479_v36, %v2715_v37  ;;  %v3522_v43 = vld [vmem:[#allocation2 + $0xc] sm:$0xff]  ;;  %v2723_v52 = vld [vmem:[%s4544_s1 + $0xb8] sm:$0xf0]  ;;  %v2729_v61 = vld [vmem:[%s4544_s1 + $0xc0] sm:$0xf] }
  0x1b   :  { %739 = vmatpush.bf16.msra.mxu1 %v3453_v11  ;;  %v924_v34 = vpack.c.b16 %v922_v31, %v922_v31  ;;  %v3483_v63 = vld [vmem:[%s4544_s1 + $0xc4] sm:$0xf]  ;;  %v2731_v0 = vld [vmem:[%s4544_s1 + $0xc8] sm:$0xf0] }
  0x1c   :  { %v2734_v2 = vor.u32 %v3483_v63, %v2731_v0  ;;  %v3487_v28 = vld [vmem:[%s4544_s1 + $0xe4] sm:$0xf] }
  0x1e   :  { %572 = vmatpush.bf16.msra.mxu0 %v3444_v12  ;;  %1002 = vmatpush.bf16.msra.mxu3 %v3521_v62  ;;  %v3484_v62 = vld [vmem:[%s4544_s1 + $0xc4] sm:$0xf0] }
  0x1f   :  { %740 = vmatpush.bf16.msra.mxu1 %v3452_v13  ;;  %v2730_v1 = vor.u32 %v3484_v62, %v2729_v61 }
  0x22   :  { %573 = vmatpush.bf16.msra.mxu0 %v3443_v14 }
  0x23   :  { %741 = vmatpush.bf16.msra.mxu1 %v3451_v15 }
  0x25   :  { %574 = vmatmul.bf16.vlgmr.msra.gmra.mxu0 %v2634_v20  ;;  %v3477_v20 = vld [vmem:[%s4544_s1 + $0x94] sm:$0xf] }
  0x26   :  { %742 = vmatmul.bf16.vlgmr.msra.gmra.mxu1 %v2638_v21  ;;  %v2707_v21 = vld [vmem:[%s4544_s1 + $0x98] sm:$0xf0] }
  0x27   :  { %v2710_v23 = vor.u32 %v3477_v20, %v2707_v21 }
  0x35   :  { %579 = vmatmul.bf16.gmra.mxu0 %v2642_v26 }
  0x36   :  { %747 = vmatmul.bf16.gmra.mxu1 %v2646_v27 }
  0x45   :  { %584 = vmatmul.bf16.gmra.mxu0 %v2650_v32 }
  0x46   :  { %752 = vmatmul.bf16.gmra.mxu1 %v2654_v33  ;;  %v2713_v33 = vld [vmem:[%s4544_s1 + $0xa0] sm:$0xf] }
  0x55   :  { %589 = vmatmul.bf16.gmra.mxu0 %v2658_v38  ;;  %v941_v38 = vsel %vm939_vm0, %v924_v34, 0 }
  0x56   :  { %757 = vmatmul.bf16.gmra.mxu1 %v2662_v39  ;;  %949 = vmatpush.bf16.msra.mxu2 %v941_v38  ;;  %v2714_v39 = vor.u32 %v3480_v35, %v2713_v33  ;;  %v3523_v35 = vld [vmem:[#allocation2 + $0x18] sm:$0xff] }
  0x5a   :  { %950 = vmatpush.bf16.msra.mxu2 %v3522_v43  ;;  %v3489_v43 = vld [vmem:[%s4544_s1 + $0xf4] sm:$0xf] }
  0x65   :  { %594 = vmatmul.bf16.gmra.mxu0 %v2666_v44 }
  0x66   :  { %762 = vmatmul.bf16.gmra.mxu1 %v2670_v45 }
  0x75   :  { %599 = vmatmul.bf16.gmra.mxu0 %v2674_v50  ;;  %v3482_v50 = vld [vmem:[%s4544_s1 + $0xb4] sm:$0xf0] }
  0x76   :  { %767 = vmatmul.bf16.gmra.mxu1 %v2678_v51  ;;  %v3481_v51 = vld [vmem:[%s4544_s1 + $0xb4] sm:$0xf]  ;;  %v2722_v53 = vor.u32 %v3482_v50, %v2721_v49 }
  0x77   :  { %v2726_v54 = vor.u32 %v3481_v51, %v2723_v52 }
  0x85   :  { %604 = vmatmul.bf16.gmra.mxu0 %v2682_v56 }
  0x86   :  { %772 = vmatmul.bf16.gmra.mxu1 %v2686_v57 }
  0x95   :  { %609 = vmatmul.bf16.gmra.mxu0 %v2690_v3 }
  0x96   :  { %777 = vmatmul.bf16.gmra.mxu1 %v2694_v4 }
  0xa2   :  { %v575_v11 = vpop.f32.mrf.mxu0 }
  0xa3   :  { %v743_v12 = vpop.f32.mrf.mxu1 }
  0xa4   :  { %v744_v15 = vadd.f32 %v743_v12, %v575_v11  ;;  %v3486_v11 = vld [vmem:[%s4544_s1 + $0xd4] sm:$0xf0]  ;;  %v3485_v12 = vld [vmem:[%s4544_s1 + $0xd4] sm:$0xf] }
  0xa5   :  { %614 = vmatmul.bf16.gmra.mxu0 %v2698_v9 }
  0xa6   :  { %782 = vmatmul.bf16.gmra.mxu1 %v2702_v10  ;;  %v2737_v10 = vld [vmem:[%s4544_s1 + $0xd0] sm:$0xf] }
  0xaa   :  { %v577_v13 = vpop.f32.mrf.mxu0 }
  0xab   :  { %v745_v14 = vpop.f32.mrf.mxu1 }
  0xac   :  { %v746_v16 = vadd.f32 %v745_v14, %v577_v13  ;;  %v2739_v13 = vld [vmem:[%s4544_s1 + $0xd8] sm:$0xf0]  ;;  %v2738_v14 = vor.u32 %v3486_v11, %v2737_v10 }
  0xae   :  { %v902_v17 = vpack.c.bf16 %v746_v16, %v744_v15  ;;  %v2742_v15 = vor.u32 %v3485_v12, %v2739_v13 }
  0xb0   :  { %2955 = vmatmul.msk.bf16.vlgmr.msra.gmra.mxu3 %vm926_vm1, %v902_v17 }
  0xb2   :  { %v580_v24 = vpop.f32.mrf.mxu0 }
  0xb3   :  { %v748_v25 = vpop.f32.mrf.mxu1 }
  0xb4   :  { %v749_v29 = vadd.f32 %v748_v25, %v580_v24  ;;  %v2745_v25 = vld [vmem:[%s4544_s1 + $0xe0] sm:$0xf] }
  0xb5   :  { %619 = vmatmul.bf16.gmra.mxu0 %v2706_v22 }
  0xb6   :  { %787 = vmatmul.bf16.gmra.mxu1 %v2710_v23  ;;  %v1030_v23 = vld [vmem:[#allocation2 + $0x20] sm:$0xf] }
  0xb7   :  { %v1036_v24 = vunpack.c.l.b16 %v1030_v23  ;;  %v3496_v23 = vld [vmem:[%s4544_s1 + $0x124] sm:$0xf0] }
  0xba   :  { %v582_v26 = vpop.f32.mrf.mxu0 }
  0xbb   :  { %v750_v27 = vpop.f32.mrf.mxu1 }
  0xbc   :  { %v751_v30 = vadd.f32 %v750_v27, %v582_v26  ;;  %v1038_v26 = vpack.c.b16 %v1036_v24, %v1036_v24  ;;  %v3488_v27 = vld [vmem:[%s4544_s1 + $0xe4] sm:$0xf0]  ;;  %v3495_v24 = vld [vmem:[%s4544_s1 + $0x124] sm:$0xf] }
  0xbd   :  { %v2746_v31 = vor.u32 %v3488_v27, %v2745_v25  ;;  %v2779_v25 = vld [vmem:[%s4544_s1 + $0x128] sm:$0xf0] }
  0xbe   :  { %v903_v32 = vpack.c.bf16 %v751_v30, %v749_v29  ;;  %v2747_v29 = vld [vmem:[%s4544_s1 + $0xe8] sm:$0xf0]  ;;  %v1053_v30 = vsel %vm939_vm0, %v1038_v26, 0 }
  0xbf   :  { %1061 = vmatpush.bf16.msrb.mxu2 %v1053_v30 }
  0xc0   :  { %2956 = vmatmul.msk.bf16.gmra.mxu3 %vm926_vm1, %v903_v32  ;;  %v2750_v32 = vor.u32 %v3487_v28, %v2747_v29  ;;  %v2782_v28 = vor.u32 %v3495_v24, %v2779_v25 }
  0xc2   :  { %v585_v41 = vpop.f32.mrf.mxu0 }
  0xc3   :  { %v753_v42 = vpop.f32.mrf.mxu1  ;;  %1062 = vmatpush.bf16.msrb.mxu2 %v3523_v35 }
  0xc4   :  { %v754_v46 = vadd.f32 %v753_v42, %v585_v41  ;;  %v2753_v41 = vld [vmem:[%s4544_s1 + $0xf0] sm:$0xf]  ;;  %v3490_v42 = vld [vmem:[%s4544_s1 + $0xf4] sm:$0xf0] }
  0xc5   :  { %624 = vmatmul.bf16.gmra.mxu0 %v2714_v39 }
  0xc6   :  { %792 = vmatmul.bf16.gmra.mxu1 %v2718_v40 }
  0xca   :  { %v587_v44 = vpop.f32.mrf.mxu0 }
  0xcb   :  { %v755_v45 = vpop.f32.mrf.mxu1 }
  0xcc   :  { %v756_v47 = vadd.f32 %v755_v45, %v587_v44  ;;  %v2755_v44 = vld [vmem:[%s4544_s1 + $0xf8] sm:$0xf0] }
  0xce   :  { %v904_v48 = vpack.c.bf16 %v756_v47, %v754_v46  ;;  %v2754_v46 = vor.u32 %v3490_v42, %v2753_v41  ;;  %v2758_v47 = vor.u32 %v3489_v43, %v2755_v44 }
  0xd0   :  { %2957 = vmatmul.msk.bf16.gmra.mxu3 %vm926_vm1, %v904_v48 }
  0xd2   :  { %v590_v55 = vpop.f32.mrf.mxu0 }
  0xd3   :  { %v758_v56 = vpop.f32.mrf.mxu1 }
  0xd4   :  { %v759_v57 = vadd.f32 %v758_v56, %v590_v55  ;;  %v3491_v55 = vld [vmem:[%s4544_s1 + $0x104] sm:$0xf]  ;;  %v2763_v56 = vld [vmem:[%s4544_s1 + $0x108] sm:$0xf0] }
  0xd5   :  { %629 = vmatmul.bf16.gmra.mxu0 %v2722_v53  ;;  %v2761_v53 = vld [vmem:[%s4544_s1 + $0x100] sm:$0xf] }
  0xd6   :  { %797 = vmatmul.bf16.gmra.mxu1 %v2726_v54  ;;  %v905_v60 = vpack.c.bf16 %v759_v57, %v759_v57  ;;  %v3492_v54 = vld [vmem:[%s4544_s1 + $0x104] sm:$0xf0] }
  0xda   :  { %v592_v58 = vpop.f32.mrf.mxu0 }
  0xdb   :  { %v760_v59 = vpop.f32.mrf.mxu1 }
  0xdc   :  { %v761_v5 = vadd.f32 %v760_v59, %v592_v58  ;;  %v2762_v58 = vor.u32 %v3492_v54, %v2761_v53  ;;  %v2766_v59 = vor.u32 %v3491_v55, %v2763_v56  ;;  %v2793_v54 = vld [vmem:[%s4544_s1 + $0x140] sm:$0xf]  ;;  %v3500_v55 = vld [vmem:[%s4544_s1 + $0x144] sm:$0xf0]  ;;  %v3499_v56 = vld [vmem:[%s4544_s1 + $0x144] sm:$0xf] }
  0xe0   :  { %2958 = vmatmul.msk.bf16.gmra.mxu3 %vm926_vm1, %v905_v60 }
  0xe2   :  { %v595_v3 = vpop.f32.mrf.mxu0 }
  0xe3   :  { %v763_v4 = vpop.f32.mrf.mxu1 }
  0xe4   :  { %v764_v6 = vadd.f32 %v763_v4, %v595_v3  ;;  %v2769_v4 = vld [vmem:[%s4544_s1 + $0x110] sm:$0xf] }
  0xe5   :  { %634 = vmatmul.bf16.gmra.mxu0 %v2730_v1 }
  0xe6   :  { %v909_v7 = vpack.c.bf16 %v764_v6, %v761_v5  ;;  %802 = vmatmul.bf16.gmra.mxu1 %v2734_v2  ;;  %v1097_v2 = vld [vmem:[#allocation2 + $0x2c] sm:$0xf]  ;;  %v3494_v5 = vld [vmem:[%s4544_s1 + $0x114] sm:$0xf0]  ;;  %v3493_v6 = vld [vmem:[%s4544_s1 + $0x114] sm:$0xf] }
  0xe7   :  { %v1103_v3 = vunpack.c.l.b16 %v1097_v2  ;;  %v2770_v11 = vor.u32 %v3494_v5, %v2769_v4 }
  0xe8   :  { %2947 = vmatmul.msk.bf16.vlgmr.msra.gmra.mxu2 %vm926_vm1, %v909_v7  ;;  %v2771_v7 = vld [vmem:[%s4544_s1 + $0x118] sm:$0xf0] }
  0xe9   :  { %v2774_v12 = vor.u32 %v3493_v6, %v2771_v7 }
  0xea   :  { %v597_v8 = vpop.f32.mrf.mxu0 }
  0xeb   :  { %v765_v9 = vpop.f32.mrf.mxu1 }
  0xec   :  { %v766_v18 = vadd.f32 %v765_v9, %v597_v8  ;;  %v1105_v8 = vpack.c.b16 %v1103_v3, %v1103_v3 }
  0xee   :  { %v1120_v9 = vsel %vm939_vm0, %v1105_v8, 0 }
  0xef   :  { %1128 = vmatpush.bf16.msrb.mxu3 %v1120_v9 }
  0xf2   :  { %v600_v16 = vpop.f32.mrf.mxu0 }
  0xf3   :  { %v768_v17 = vpop.f32.mrf.mxu1 }
  0xf4   :  { %v769_v19 = vadd.f32 %v768_v17, %v600_v16  ;;  %v3524_v17 = vld [vmem:[#allocation2 + $0x24] sm:$0xff] }
  0xf5   :  { %639 = vmatmul.bf16.gmra.mxu0 %v2738_v14  ;;  %1129 = vmatpush.bf16.msrb.mxu3 %v3524_v17 }
  0xf6   :  { %v910_v20 = vpack.c.bf16 %v769_v19, %v766_v18  ;;  %807 = vmatmul.bf16.gmra.mxu1 %v2742_v15 }
  0xf8   :  { %2948 = vmatmul.msk.bf16.gmra.mxu2 %vm926_vm1, %v910_v20 }
  0xfa   :  { %v602_v21 = vpop.f32.mrf.mxu0 }
  0xfb   :  { %v770_v22 = vpop.f32.mrf.mxu1 }
  0xfc   :  { %v771_v36 = vadd.f32 %v770_v22, %v602_v21  ;;  %v2777_v22 = vld [vmem:[%s4544_s1 + $0x120] sm:$0xf] }
  0xfd   :  { %v2778_v27 = vor.u32 %v3496_v23, %v2777_v22 }
 0x102   :  { %v605_v33 = vpop.f32.mrf.mxu0 }
 0x103   :  { %v773_v34 = vpop.f32.mrf.mxu1 }
 0x104   :  { %v774_v37 = vadd.f32 %v773_v34, %v605_v33 }
 0x105   :  { %644 = vmatmul.bf16.gmra.mxu0 %v2746_v31 }
 0x106   :  { %v911_v38 = vpack.c.bf16 %v774_v37, %v771_v36  ;;  %812 = vmatmul.bf16.gmra.mxu1 %v2750_v32  ;;  %v2785_v37 = vld [vmem:[%s4544_s1 + $0x130] sm:$0xf] }
 0x108   :  { %2949 = vmatmul.msk.bf16.gmra.mxu2 %vm926_vm1, %v911_v38  ;;  %v3498_v38 = vld [vmem:[%s4544_s1 + $0x134] sm:$0xf0] }
 0x109   :  { %v2786_v42 = vor.u32 %v3498_v38, %v2785_v37 }
 0x10a   :  { %v607_v39 = vpop.f32.mrf.mxu0 }
 0x10b   :  { %v775_v40 = vpop.f32.mrf.mxu1 }
 0x10c   :  { %v776_v45 = vadd.f32 %v775_v40, %v607_v39  ;;  %v3497_v39 = vld [vmem:[%s4544_s1 + $0x134] sm:$0xf]  ;;  %v2787_v40 = vld [vmem:[%s4544_s1 + $0x138] sm:$0xf0] }
 0x10d   :  { %v2790_v43 = vor.u32 %v3497_v39, %v2787_v40 }
 0x10e   :  { %v912_v50 = vpack.c.bf16 %v776_v45, %v776_v45 }
 0x112   :  { %v610_v48 = vpop.f32.mrf.mxu0 }
 0x113   :  { %v778_v49 = vpop.f32.mrf.mxu1 }
 0x114   :  { %v779_v62 = vadd.f32 %v778_v49, %v610_v48 }
 0x115   :  { %649 = vmatmul.bf16.gmra.mxu0 %v2754_v46 }
 0x116   :  { %817 = vmatmul.bf16.gmra.mxu1 %v2758_v47 }
 0x118   :  { %2950 = vmatmul.msk.bf16.gmra.mxu2 %vm926_vm1, %v912_v50 }
 0x11a   :  { %v612_v51 = vpop.f32.mrf.mxu0 }
 0x11b   :  { %v780_v52 = vpop.f32.mrf.mxu1 }
 0x11c   :  { %v781_v57 = vadd.f32 %v780_v52, %v612_v51 }
 0x11e   :  { %v1023_v63 = vpack.c.bf16 %v781_v57, %v779_v62  ;;  %v2795_v57 = vld [vmem:[%s4544_s1 + $0x148] sm:$0xf0] }
 0x122   :  { %v615_v60 = vpop.f32.mrf.mxu0 }
 0x123   :  { %v783_v61 = vpop.f32.mrf.mxu1 }
 0x124   :  { %v784_v15 = vadd.f32 %v783_v61, %v615_v60 }
 0x125   :  { %654 = vmatmul.bf16.gmra.mxu0 %v2762_v58  ;;  %v2794_v58 = vor.u32 %v3500_v55, %v2793_v54 }
 0x126   :  { %822 = vmatmul.bf16.gmra.mxu1 %v2766_v59  ;;  %v2798_v59 = vor.u32 %v3499_v56, %v2795_v57 }
 0x128   :  { %2963 = vmatmul.msk.bf16.vlgmr.msrb.gmra.mxu2 %vm926_vm1, %v1023_v63 }
 0x12a   :  { %v617_v0 = vpop.f32.mrf.mxu0 }
 0x12b   :  { %v785_v1 = vpop.f32.mrf.mxu1 }
 0x12c   :  { %v786_v10 = vadd.f32 %v785_v1, %v617_v0  ;;  %v1164_v1 = vld [vmem:[#allocation2 + $0x38] sm:$0xf] }
 0x12d   :  { %v1170_v3 = vunpack.c.l.b16 %v1164_v1 }
 0x12e   :  { %v1024_v18 = vpack.c.bf16 %v786_v10, %v784_v15  ;;  %v3525_v10 = vld [vmem:[#allocation2 + $0x30] sm:$0xff]  ;;  %v2803_v15 = vld [vmem:[%s4544_s1 + $0x158] sm:$0xf0] }
 0x12f   :  { %v1172_v4 = vpack.c.b16 %v1170_v3, %v1170_v3 }
 0x131   :  { %v1187_v5 = vsel %vm939_vm0, %v1172_v4, 0  ;;  %v2825_v4 = vld [vmem:[%s4544_s1 + $0x180] sm:$0xf] }
 0x132   :  { %v620_v13 = vpop.f32.mrf.mxu0  ;;  %1195 = vmatpush.bf16.msra.mxu2 %v1187_v5  ;;  %v3508_v5 = vld [vmem:[%s4544_s1 + $0x184] sm:$0xf0] }
 0x133   :  { %v788_v14 = vpop.f32.mrf.mxu1  ;;  %v3985_v16 = vpop.f32.mrf.mxu3 }
 0x134   :  { %v789_v31 = vadd.f32 %v788_v14, %v620_v13  ;;  %v3502_v13 = vld [vmem:[%s4544_s1 + $0x154] sm:$0xf0]  ;;  %v3501_v14 = vld [vmem:[%s4544_s1 + $0x154] sm:$0xf] }
 0x135   :  { %659 = vmatmul.bf16.gmra.mxu0 %v2770_v11 }
 0x136   :  { %827 = vmatmul.bf16.gmra.mxu1 %v2774_v12  ;;  %v2801_v12 = vld [vmem:[%s4544_s1 + $0x150] sm:$0xf]  ;;  %1196 = vmatpush.bf16.msra.mxu2 %v3525_v10 }
 0x137   :  { %v2802_v17 = vor.u32 %v3502_v13, %v2801_v12 }
 0x138   :  { %2964 = vmatmul.msk.bf16.gmra.mxu2 %vm926_vm1, %v1024_v18 }
 0x13a   :  { %v622_v19 = vpop.f32.mrf.mxu0 }
 0x13b   :  { %v790_v20 = vpop.f32.mrf.mxu1  ;;  %v3988_v21 = vpop.f32.mrf.mxu3 }
 0x13c   :  { %v791_v26 = vadd.f32 %v790_v20, %v622_v19 }
 0x13e   :  { %v1025_v33 = vpack.c.bf16 %v791_v26, %v789_v31  ;;  %v3503_v31 = vld [vmem:[%s4544_s1 + $0x164] sm:$0xf] }
 0x142   :  { %v625_v29 = vpop.f32.mrf.mxu0 }
 0x143   :  { %v793_v30 = vpop.f32.mrf.mxu1  ;;  %v4002_v32 = vpop.f32.mrf.mxu3 }
 0x144   :  { %v794_v41 = vadd.f32 %v793_v30, %v625_v29  ;;  %v2809_v29 = vld [vmem:[%s4544_s1 + $0x160] sm:$0xf]  ;;  %v3504_v30 = vld [vmem:[%s4544_s1 + $0x164] sm:$0xf0] }
 0x145   :  { %664 = vmatmul.bf16.gmra.mxu0 %v2778_v27 }
 0x146   :  { %832 = vmatmul.bf16.gmra.mxu1 %v2782_v28  ;;  %v1026_v49 = vpack.c.bf16 %v794_v41, %v794_v41 }
 0x148   :  { %2965 = vmatmul.msk.bf16.gmra.mxu2 %vm926_vm1, %v1025_v33  ;;  %v2811_v33 = vld [vmem:[%s4544_s1 + $0x168] sm:$0xf0] }
 0x14a   :  { %v627_v34 = vpop.f32.mrf.mxu0 }
 0x14b   :  { %v795_v35 = vpop.f32.mrf.mxu1  ;;  %v4005_v36 = vpop.f32.mrf.mxu3 }
 0x14c   :  { %v796_v46 = vadd.f32 %v795_v35, %v627_v34  ;;  %v2810_v35 = vor.u32 %v3504_v30, %v2809_v29  ;;  %v2835_v29 = vld [vmem:[%s4544_s1 + $0x198] sm:$0xf0] }
 0x152   :  { %v630_v44 = vpop.f32.mrf.mxu0 }
 0x153   :  { %v798_v45 = vpop.f32.mrf.mxu1  ;;  %v4019_v48 = vpop.f32.mrf.mxu3 }
 0x154   :  { %v799_v47 = vadd.f32 %v798_v45, %v630_v44 }
 0x155   :  { %669 = vmatmul.bf16.gmra.mxu0 %v2786_v42 }
 0x156   :  { %v1090_v50 = vpack.c.bf16 %v799_v47, %v796_v46  ;;  %837 = vmatmul.bf16.gmra.mxu1 %v2790_v43 }
 0x158   :  { %2966 = vmatmul.msk.bf16.gmra.mxu2 %vm926_vm1, %v1026_v49  ;;  %2971 = vmatmul.msk.bf16.vlgmr.msrb.gmra.mxu3 %vm926_vm1, %v1090_v50  ;;  %v2817_v49 = vld [vmem:[%s4544_s1 + $0x170] sm:$0xf]  ;;  %v3506_v50 = vld [vmem:[%s4544_s1 + $0x174] sm:$0xf0] }
 0x15a   :  { %v632_v51 = vpop.f32.mrf.mxu0 }
 0x15b   :  { %v800_v52 = vpop.f32.mrf.mxu1  ;;  %v4023_v53 = vpop.f32.mrf.mxu3 }
 0x15c   :  { %v801_v62 = vadd.f32 %v800_v52, %v632_v51  ;;  %v3505_v51 = vld [vmem:[%s4544_s1 + $0x174] sm:$0xf]  ;;  %v2819_v52 = vld [vmem:[%s4544_s1 + $0x178] sm:$0xf0] }
 0x15d   :  { %v2822_v54 = vor.u32 %v3505_v51, %v2819_v52 }
 0x162   :  { %v635_v60 = vpop.f32.mrf.mxu0 }
 0x163   :  { %v803_v61 = vpop.f32.mrf.mxu1  ;;  %v4037_v0 = vpop.f32.mrf.mxu3 }
 0x164   :  { %v804_v63 = vadd.f32 %v803_v61, %v635_v60 }
 0x165   :  { %674 = vmatmul.bf16.gmra.mxu0 %v2794_v58 }
 0x166   :  { %v1091_v2 = vpack.c.bf16 %v804_v63, %v801_v62  ;;  %842 = vmatmul.bf16.gmra.mxu1 %v2798_v59  ;;  %v1231_v63 = vld [vmem:[#allocation2 + $0x44] sm:$0xf] }
 0x168   :  { %2972 = vmatmul.msk.bf16.gmra.mxu3 %vm926_vm1, %v1091_v2  ;;  %v1237_v2 = vunpack.c.l.b16 %v1231_v63  ;;  %v2851_v63 = vld [vmem:[%s4544_s1 + $0x1b8] sm:$0xf0] }
 0x16a   :  { %v637_v6 = vpop.f32.mrf.mxu0 }
 0x16b   :  { %v805_v7 = vpop.f32.mrf.mxu1  ;;  %v952_v8 = vpop.f32.mrf.mxu2 }
 0x16c   :  { %v1021_v9 = vpop.f32.mrf.mxu3  ;;  %v4042_v11 = vadd.f32 %v3985_v16, %v952_v8  ;;  %v2806_v16 = vor.u32 %v3501_v14, %v2803_v15  ;;  %v806_v20 = vadd.f32 %v805_v7, %v637_v6  ;;  %v3507_v6 = vld [vmem:[%s4544_s1 + $0x184] sm:$0xf]  ;;  %v2827_v7 = vld [vmem:[%s4544_s1 + $0x188] sm:$0xf0]  ;;  %v3526_v15 = vld [vmem:[#allocation2 + $0x3c] sm:$0xff] }
 0x16d   :  { %v2826_v9 = vor.u32 %v3508_v5, %v2825_v4  ;;  %v2830_v10 = vor.u32 %v3507_v6, %v2827_v7 }
 0x172   :  { %v640_v18 = vpop.f32.mrf.mxu0 }
 0x173   :  { %v808_v19 = vpop.f32.mrf.mxu1  ;;  %v4056_v23 = vpop.f32.mrf.mxu2 }
 0x174   :  { %v809_v22 = vadd.f32 %v808_v19, %v640_v18 }
 0x175   :  { %679 = vmatmul.bf16.gmra.mxu0 %v2802_v17 }
 0x176   :  { %v1092_v24 = vpack.c.bf16 %v809_v22, %v806_v20  ;;  %847 = vmatmul.bf16.gmra.mxu1 %v2806_v16 }
 0x178   :  { %2973 = vmatmul.msk.bf16.gmra.mxu3 %vm926_vm1, %v1092_v24 }
 0x17a   :  { %v642_v25 = vpop.f32.mrf.mxu0 }
 0x17b   :  { %v810_v26 = vpop.f32.mrf.mxu1  ;;  %v957_v27 = vpop.f32.mrf.mxu2 }
 0x17c   :  { %v4060_v28 = vadd.f32 %v4002_v32, %v957_v27  ;;  %v811_v34 = vadd.f32 %v810_v26, %v642_v25  ;;  %v2814_v32 = vor.u32 %v3503_v31, %v2811_v33  ;;  %v2833_v25 = vld [vmem:[%s4544_s1 + $0x190] sm:$0xf]  ;;  %v3510_v26 = vld [vmem:[%s4544_s1 + $0x194] sm:$0xf0]  ;;  %v3509_v27 = vld [vmem:[%s4544_s1 + $0x194] sm:$0xf] }
 0x17d   :  { %v2838_v30 = vor.u32 %v3509_v27, %v2835_v29 }
 0x17e   :  { %v1093_v40 = vpack.c.bf16 %v811_v34, %v811_v34 }
 0x182   :  { %v645_v37 = vpop.f32.mrf.mxu0 }
 0x183   :  { %v813_v38 = vpop.f32.mrf.mxu1  ;;  %v4074_v39 = vpop.f32.mrf.mxu2 }
 0x184   :  { %v814_v43 = vadd.f32 %v813_v38, %v645_v37 }
 0x185   :  { %684 = vmatmul.bf16.gmra.mxu0 %v2810_v35 }
 0x186   :  { %852 = vmatmul.bf16.gmra.mxu1 %v2814_v32 }
 0x188   :  { %2974 = vmatmul.msk.bf16.gmra.mxu3 %vm926_vm1, %v1093_v40 }
 0x18a   :  { %v647_v41 = vpop.f32.mrf.mxu0 }
 0x18b   :  { %v815_v42 = vpop.f32.mrf.mxu1  ;;  %v962_v45 = vpop.f32.mrf.mxu2 }
 0x18c   :  { %v816_v44 = vadd.f32 %v815_v42, %v647_v41  ;;  %v4078_v46 = vadd.f32 %v4019_v48, %v962_v45  ;;  %v2818_v48 = vor.u32 %v3506_v50, %v2817_v49  ;;  %v2841_v42 = vld [vmem:[%s4544_s1 + $0x1a0] sm:$0xf]  ;;  %v2843_v45 = vld [vmem:[%s4544_s1 + $0x1a8] sm:$0xf0] }
 0x18e   :  { %v1157_v47 = vpack.c.bf16 %v816_v44, %v814_v43  ;;  %v3512_v43 = vld [vmem:[%s4544_s1 + $0x1a4] sm:$0xf0]  ;;  %v3511_v44 = vld [vmem:[%s4544_s1 + $0x1a4] sm:$0xf] }
 0x190   :  { %2979 = vmatmul.msk.bf16.vlgmr.msra.gmra.mxu2 %vm926_vm1, %v1157_v47  ;;  %v2846_v47 = vor.u32 %v3511_v44, %v2843_v45  ;;  %v3517_v44 = vld [vmem:[%s4544_s1 + $0x1d4] sm:$0xf]  ;;  %v2867_v45 = vld [vmem:[%s4544_s1 + $0x1d8] sm:$0xf0] }
 0x192   :  { %v650_v55 = vpop.f32.mrf.mxu0 }
 0x193   :  { %v818_v56 = vpop.f32.mrf.mxu1  ;;  %v4093_v57 = vpop.f32.mrf.mxu2 }
 0x194   :  { %v819_v60 = vadd.f32 %v818_v56, %v650_v55 }
 0x195   :  { %689 = vmatmul.bf16.gmra.mxu0 %v2818_v48 }
 0x196   :  { %857 = vmatmul.bf16.gmra.mxu1 %v2822_v54 }
 0x19a   :  { %v652_v58 = vpop.f32.mrf.mxu0 }
 0x19b   :  { %v820_v59 = vpop.f32.mrf.mxu1  ;;  %v967_v62 = vpop.f32.mrf.mxu2 }
 0x19c   :  { %v821_v61 = vadd.f32 %v820_v59, %v652_v58  ;;  %v4096_v1 = vadd.f32 %v4037_v0, %v967_v62  ;;  %v1239_v0 = vpack.c.b16 %v1237_v2, %v1237_v2  ;;  %v3513_v62 = vld [vmem:[%s4544_s1 + $0x1b4] sm:$0xf] }
 0x19e   :  { %v1158_v3 = vpack.c.bf16 %v821_v61, %v819_v60  ;;  %v1254_v8 = vsel %vm939_vm0, %v1239_v0, 0  ;;  %v2849_v60 = vld [vmem:[%s4544_s1 + $0x1b0] sm:$0xf]  ;;  %v3514_v61 = vld [vmem:[%s4544_s1 + $0x1b4] sm:$0xf0] }
 0x19f   :  { %1262 = vmatpush.bf16.msra.mxu3 %v1254_v8  ;;  %v2850_v2 = vor.u32 %v3514_v61, %v2849_v60  ;;  %v1298_v0 = vld [vmem:[#allocation2 + $0x50] sm:$0xf] }
 0x1a0   :  { %2980 = vmatmul.msk.bf16.gmra.mxu2 %vm926_vm1, %v1158_v3  ;;  %v2854_v3 = vor.u32 %v3513_v62, %v2851_v63  ;;  %v2873_v63 = vld [vmem:[%s4544_s1 + $0x1e0] sm:$0xf] }
 0x1a2   :  { %v655_v12 = vpop.f32.mrf.mxu0 }
 0x1a3   :  { %v823_v13 = vpop.f32.mrf.mxu1  ;;  %v969_v14 = vpop.f32.mrf.mxu2  ;;  %1263 = vmatpush.bf16.msra.mxu3 %v3526_v15 }
 0x1a4   :  { %v824_v18 = vadd.f32 %v823_v13, %v655_v12 }
 0x1a5   :  { %694 = vmatmul.bf16.gmra.mxu0 %v2826_v9  ;;  %v1304_v9 = vunpack.c.l.b16 %v1298_v0 }
 0x1a6   :  { %862 = vmatmul.bf16.gmra.mxu1 %v2830_v10 }
 0x1a7   :  { %v1306_v10 = vpack.c.b16 %v1304_v9, %v1304_v9 }
 0x1a9   :  { %v1321_v12 = vsel %vm939_vm0, %v1306_v10, 0  ;;  %v152_v10 = vld [vmem:[%s4544_s1 + $0x1f0] sm:$0xff] }
 0x1aa   :  { %v657_v17 = vpop.f32.mrf.mxu0  ;;  %1329 = vmatpush.bf16.msrb.mxu2 %v1321_v12 }
 0x1ab   :  { %v825_v16 = vpop.f32.mrf.mxu1  ;;  %v1064_v20 = vpop.f32.mrf.mxu2 }
 0x1ac   :  { %v826_v19 = vadd.f32 %v825_v16, %v657_v17  ;;  %v4113_v22 = vadd.f32 %v1064_v20, %v4042_v11  ;;  %v2834_v11 = vor.u32 %v3510_v26, %v2833_v25  ;;  %v3527_v16 = vld [vmem:[#allocation2 + $0x48] sm:$0xff]  ;;  %v2857_v20 = vld [vmem:[%s4544_s1 + $0x1c0] sm:$0xf]  ;;  %v3515_v25 = vld [vmem:[%s4544_s1 + $0x1c4] sm:$0xf] }
 0x1ae   :  { %v1159_v24 = vpack.c.bf16 %v826_v19, %v824_v18  ;;  %1330 = vmatpush.bf16.msrb.mxu2 %v3527_v16 }
 0x1b0   :  { %2981 = vmatmul.msk.bf16.gmra.mxu2 %vm926_vm1, %v1159_v24  ;;  %v3516_v24 = vld [vmem:[%s4544_s1 + $0x1c4] sm:$0xf0] }
 0x1b1   :  { %v2858_v26 = vor.u32 %v3516_v24, %v2857_v20  ;;  %v340_v24 = vunpack.c.l.b16 %v152_v10 }
 0x1b2   :  { %v660_v31 = vpop.f32.mrf.mxu0 }
 0x1b3   :  { %v828_v33 = vpop.f32.mrf.mxu1  ;;  %v4128_v34 = vpop.f32.mrf.mxu2 }
 0x1b4   :  { %v829_v35 = vadd.f32 %v828_v33, %v660_v31 }
 0x1b5   :  { %699 = vmatmul.bf16.gmra.mxu0 %v2834_v11 }
 0x1b6   :  { %867 = vmatmul.bf16.gmra.mxu1 %v2838_v30  ;;  %v1160_v41 = vpack.c.bf16 %v829_v35, %v829_v35 }
 0x1ba   :  { %v662_v32 = vpop.f32.mrf.mxu0 }
 0x1bb   :  { %v830_v37 = vpop.f32.mrf.mxu1  ;;  %v1069_v38 = vpop.f32.mrf.mxu2 }
 0x1bc   :  { %v4131_v40 = vadd.f32 %v1069_v38, %v4060_v28  ;;  %v2842_v28 = vor.u32 %v3512_v43, %v2841_v42  ;;  %v831_v51 = vadd.f32 %v830_v37, %v662_v32  ;;  %v2865_v42 = vld [vmem:[%s4544_s1 + $0x1d0] sm:$0xf]  ;;  %v3518_v43 = vld [vmem:[%s4544_s1 + $0x1d4] sm:$0xf0] }
 0x1c0   :  { %2982 = vmatmul.msk.bf16.gmra.mxu2 %vm926_vm1, %v1160_v41 }
 0x1c2   :  { %v665_v49 = vpop.f32.mrf.mxu0 }
 0x1c3   :  { %v833_v50 = vpop.f32.mrf.mxu1  ;;  %v4146_v48 = vpop.f32.mrf.mxu2 }
 0x1c4   :  { %v834_v52 = vadd.f32 %v833_v50, %v665_v49 }
 0x1c5   :  { %704 = vmatmul.bf16.gmra.mxu0 %v2842_v28 }
 0x1c6   :  { %v1224_v54 = vpack.c.bf16 %v834_v52, %v831_v51  ;;  %872 = vmatmul.bf16.gmra.mxu1 %v2846_v47  ;;  %v2866_v47 = vor.u32 %v3518_v43, %v2865_v42 }
 0x1c8   :  { %2987 = vmatmul.msk.bf16.vlgmr.msra.gmra.mxu3 %vm926_vm1, %v1224_v54 }
 0x1ca   :  { %v667_v55 = vpop.f32.mrf.mxu0 }
 0x1cb   :  { %v835_v56 = vpop.f32.mrf.mxu1  ;;  %v1074_v58 = vpop.f32.mrf.mxu2 }
 0x1cc   :  { %v4150_v59 = vadd.f32 %v1074_v58, %v4078_v46  ;;  %v836_v5 = vadd.f32 %v835_v56, %v667_v55 }
 0x1d2   :  { %v670_v46 = vpop.f32.mrf.mxu0 }
 0x1d3   :  { %v838_v4 = vpop.f32.mrf.mxu1  ;;  %v4164_v7 = vpop.f32.mrf.mxu2 }
 0x1d4   :  { %v839_v6 = vadd.f32 %v838_v4, %v670_v46  ;;  %v2875_v46 = vld [vmem:[%s4544_s1 + $0x1e8] sm:$0xf0] }
 0x1d5   :  { %709 = vmatmul.bf16.gmra.mxu0 %v2850_v2  ;;  %v3520_v2 = vld [vmem:[%s4544_s1 + $0x1e4] sm:$0xf0] }
 0x1d6   :  { %v1225_v8 = vpack.c.bf16 %v839_v6, %v836_v5  ;;  %877 = vmatmul.bf16.gmra.mxu1 %v2854_v3  ;;  %v3519_v3 = vld [vmem:[%s4544_s1 + $0x1e4] sm:$0xf] }
 0x1d7   :  { %v2878_v4 = vor.u32 %v3519_v3, %v2875_v46 }
 0x1d8   :  { %2988 = vmatmul.msk.bf16.gmra.mxu3 %vm926_vm1, %v1225_v8 }
 0x1da   :  { %v672_v13 = vpop.f32.mrf.mxu0 }
 0x1db   :  { %v840_v14 = vpop.f32.mrf.mxu1  ;;  %v1079_v15 = vpop.f32.mrf.mxu2 }
 0x1dc   :  { %v1131_v17 = vpop.f32.mrf.mxu3  ;;  %v4169_v18 = vadd.f32 %v1079_v15, %v4096_v1  ;;  %v2859_v1 = vld [vmem:[%s4544_s1 + $0x1c8] sm:$0xf0]  ;;  %v841_v11 = vadd.f32 %v840_v14, %v672_v13  ;;  %v1365_v15 = vld [vmem:[#allocation2 + $0x5c] sm:$0xf] }
 0x1dd   :  { %v4172_v19 = vadd.f32 %v1131_v17, %v4113_v22  ;;  %v2862_v22 = vor.u32 %v3515_v25, %v2859_v1  ;;  %v1371_v16 = vunpack.c.l.b16 %v1365_v15  ;;  %v341_v25 = vunpack.c.h.b16 %v152_v10 }
 0x1df   :  { %v1373_v1 = vpack.c.b16 %v1371_v16, %v1371_v16 }
 0x1e2   :  { %v675_v27 = vpop.f32.mrf.mxu0 }
 0x1e3   :  { %v843_v29 = vpop.f32.mrf.mxu1  ;;  %v1081_v31 = vpop.f32.mrf.mxu2 }
 0x1e4   :  { %v844_v30 = vadd.f32 %v843_v29, %v675_v27  ;;  %v4186_v33 = vpop.f32.mrf.mxu3  ;;  %v405_v27 = vpack.c.b16 %v341_v25, %v341_v25  ;;  %v3529_v25 = vld [vmem:[#allocation2 + $0x60] sm:$0xff] }
 0x1e5   :  { %714 = vmatmul.bf16.gmra.mxu0 %v2858_v26  ;;  %v1388_v26 = vsel %vm939_vm0, %v1373_v1, 0 }
 0x1e6   :  { %v1226_v35 = vpack.c.bf16 %v844_v30, %v841_v11  ;;  %882 = vmatmul.bf16.gmra.mxu1 %v2862_v22  ;;  %v404_v22 = vpack.c.b16 %v340_v24, %v340_v24  ;;  %1396 = vmatpush.bf16.msrb.mxu3 %v1388_v26 }
 0x1e8   :  { %2989 = vmatmul.msk.bf16.gmra.mxu3 %vm926_vm1, %v1226_v35  ;;  %v3528_v35 = vld [vmem:[#allocation2 + $0x54] sm:$0xff] }
 0x1ea   :  { %v677_v32 = vpop.f32.mrf.mxu0  ;;  %1397 = vmatpush.bf16.msrb.mxu3 %v3528_v35 }
 0x1eb   :  { %v845_v37 = vpop.f32.mrf.mxu1 }
 0x1ec   :  { %v1136_v38 = vpop.f32.mrf.mxu3  ;;  %v846_v28 = vadd.f32 %v845_v37, %v677_v32 }
 0x1ed   :  { %v4190_v41 = vadd.f32 %v1136_v38, %v4131_v40  ;;  %v2870_v40 = vor.u32 %v3517_v44, %v2867_v45 }
 0x1ee   :  { %v1227_v52 = vpack.c.bf16 %v846_v28, %v846_v28 }
 0x1f2   :  { %v680_v49 = vpop.f32.mrf.mxu0 }
 0x1f3   :  { %v848_v50 = vpop.f32.mrf.mxu1 }
 0x1f4   :  { %v4204_v51 = vpop.f32.mrf.mxu3  ;;  %v849_v56 = vadd.f32 %v848_v50, %v680_v49 }
 0x1f5   :  { %719 = vmatmul.bf16.gmra.mxu0 %v2866_v47 }
 0x1f6   :  { %887 = vmatmul.bf16.gmra.mxu1 %v2870_v40 }
 0x1f8   :  { %2990 = vmatmul.msk.bf16.gmra.mxu3 %vm926_vm1, %v1227_v52 }
 0x1fa   :  { %v682_v54 = vpop.f32.mrf.mxu0 }
 0x1fb   :  { %v850_v55 = vpop.f32.mrf.mxu1 }
 0x1fc   :  { %v851_v58 = vadd.f32 %v850_v55, %v682_v54  ;;  %v1141_v60 = vpop.f32.mrf.mxu3 }
 0x1fd   :  { %v4208_v61 = vadd.f32 %v1141_v60, %v4150_v59  ;;  %v2874_v59 = vor.u32 %v3520_v2, %v2873_v63 }
 0x1fe   :  { %v1291_v62 = vpack.c.bf16 %v851_v58, %v849_v56 }
 0x200   :  { %2995 = vmatmul.msk.bf16.vlgmr.msrb.gmra.mxu2 %vm926_vm1, %v1291_v62 }
 0x202   :  { %v685_v5 = vpop.f32.mrf.mxu0 }
 0x203   :  { %v853_v6 = vpop.f32.mrf.mxu1 }
 0x204   :  { %v4223_v0 = vpop.f32.mrf.mxu3  ;;  %v854_v12 = vadd.f32 %v853_v6, %v685_v5 }
 0x205   :  { %724 = vmatmul.bf16.gmra.mxu0 %v2874_v59  ;;  %v1432_v59 = vld [vmem:[#allocation2 + $0x68] sm:$0xf] }
 0x206   :  { %892 = vmatmul.bf16.gmra.mxu1 %v2878_v4  ;;  %v1438_v4 = vunpack.c.l.b16 %v1432_v59 }
 0x208   :  { %v1440_v5 = vpack.c.b16 %v1438_v4, %v1438_v4 }
 0x20a   :  { %v687_v8 = vpop.f32.mrf.mxu0 }
 0x20b   :  { %v855_v9 = vpop.f32.mrf.mxu1 }
 0x20c   :  { %v856_v13 = vadd.f32 %v855_v9, %v687_v8  ;;  %v1146_v14 = vpop.f32.mrf.mxu3  ;;  %v1455_v9 = vsel %vm939_vm0, %v1440_v5, 0 }
 0x20d   :  { %v1156_v17 = vadd.f32 %v1146_v14, %v4169_v18  ;;  %1463 = vmatpush.bf16.msra.mxu2 %v1455_v9 }
 0x20e   :  { %v1292_v20 = vpack.c.bf16 %v856_v13, %v854_v12 }
 0x210   :  { %2996 = vmatmul.msk.bf16.gmra.mxu2 %vm926_vm1, %v1292_v20 }
 0x211   :  { %1464 = vmatpush.bf16.msra.mxu2 %v3529_v25 }
 0x212   :  { %v690_v29 = vpop.f32.mrf.mxu0 }
 0x213   :  { %v858_v11 = vpop.f32.mrf.mxu1  ;;  %v1198_v31 = vpop.f32.mrf.mxu2 }
 0x214   :  { %v1148_v30 = vpop.f32.mrf.mxu3  ;;  %v1217_v32 = vadd.f32 %v1198_v31, %v4172_v19  ;;  %v859_v38 = vadd.f32 %v858_v11, %v690_v29 }
 0x215   :  { %729 = vmatmul.bf16.gmra.mxu0 %v404_v22 }
 0x216   :  { %897 = vmatmul.bf16.gmra.mxu1 %v405_v27 }
 0x21a   :  { %v692_v18 = vpop.f32.mrf.mxu0 }
 0x21b   :  { %v860_v37 = vpop.f32.mrf.mxu1  ;;  %v4232_v43 = vpop.f32.mrf.mxu2 }
 0x21c   :  { %v861_v42 = vadd.f32 %v860_v37, %v692_v18 }
 0x21e   :  { %v1293_v44 = vpack.c.bf16 %v861_v42, %v859_v38 }
 0x220   :  { %2997 = vmatmul.msk.bf16.gmra.mxu2 %vm926_vm1, %v1293_v44 }
 0x222   :  { %v695_v45 = vpop.f32.mrf.mxu0 }
 0x223   :  { %v863_v28 = vpop.f32.mrf.mxu1  ;;  %v1203_v47 = vpop.f32.mrf.mxu2 }
 0x224   :  { %v1219_v40 = vadd.f32 %v1203_v47, %v4190_v41  ;;  %v864_v49 = vadd.f32 %v863_v28, %v695_v45 }
 0x226   :  { %v1294_v54 = vpack.c.bf16 %v864_v49, %v864_v49 }
 0x22a   :  { %v697_v50 = vpop.f32.mrf.mxu0 }
 0x22b   :  { %v865_v19 = vpop.f32.mrf.mxu1  ;;  %v4236_v52 = vpop.f32.mrf.mxu2 }
 0x22c   :  { %v866_v58 = vadd.f32 %v865_v19, %v697_v50 }
 0x230   :  { %2998 = vmatmul.msk.bf16.gmra.mxu2 %vm926_vm1, %v1294_v54 }
 0x232   :  { %v700_v55 = vpop.f32.mrf.mxu0 }
 0x233   :  { %v868_v56 = vpop.f32.mrf.mxu1  ;;  %v1208_v62 = vpop.f32.mrf.mxu2 }
 0x234   :  { %v869_v60 = vadd.f32 %v868_v56, %v700_v55  ;;  %v1221_v63 = vadd.f32 %v1208_v62, %v4208_v61 }
 0x236   :  { %v1358_v2 = vpack.c.bf16 %v869_v60, %v866_v58 }
 0x238   :  { %3003 = vmatmul.msk.bf16.vlgmr.msrb.gmra.mxu3 %vm926_vm1, %v1358_v2 }
 0x23a   :  { %v702_v3 = vpop.f32.mrf.mxu0 }
 0x23b   :  { %v870_v41 = vpop.f32.mrf.mxu1  ;;  %v4241_v46 = vpop.f32.mrf.mxu2 }
 0x23c   :  { %v871_v10 = vadd.f32 %v870_v41, %v702_v3 }
 0x242   :  { %v705_v6 = vpop.f32.mrf.mxu0 }
 0x243   :  { %v873_v8 = vpop.f32.mrf.mxu1  ;;  %v1213_v13 = vpop.f32.mrf.mxu2 }
 0x244   :  { %v874_v12 = vadd.f32 %v873_v8, %v705_v6  ;;  %v1223_v14 = vadd.f32 %v1213_v13, %v1156_v17 }
 0x246   :  { %v1359_v61 = vpack.c.bf16 %v874_v12, %v871_v10 }
 0x248   :  { %3004 = vmatmul.msk.bf16.gmra.mxu3 %vm926_vm1, %v1359_v61 }
 0x24a   :  { %v707_v15 = vpop.f32.mrf.mxu0 }
 0x24b   :  { %v875_v16 = vpop.f32.mrf.mxu1  ;;  %v1215_v20 = vpop.f32.mrf.mxu2 }
 0x24c   :  { %v1265_v24 = vpop.f32.mrf.mxu3  ;;  %v876_v27 = vadd.f32 %v875_v16, %v707_v15 }
 0x24d   :  { %v1284_v1 = vadd.f32 %v1265_v24, %v1217_v32 }
 0x252   :  { %v710_v26 = vpop.f32.mrf.mxu0 }
 0x253   :  { %v878_v22 = vpop.f32.mrf.mxu1 }
 0x254   :  { %v879_v29 = vadd.f32 %v878_v22, %v710_v26  ;;  %v4245_v11 = vpop.f32.mrf.mxu3 }
 0x256   :  { %v1360_v30 = vpack.c.bf16 %v879_v29, %v876_v27 }
 0x258   :  { %3005 = vmatmul.msk.bf16.gmra.mxu3 %vm926_vm1, %v1360_v30 }
 0x25a   :  { %v712_v17 = vpop.f32.mrf.mxu0 }
 0x25b   :  { %v880_v31 = vpop.f32.mrf.mxu1 }
 0x25c   :  { %v1270_v35 = vpop.f32.mrf.mxu3  ;;  %v881_v37 = vadd.f32 %v880_v31, %v712_v17 }
 0x25d   :  { %v1286_v18 = vadd.f32 %v1270_v35, %v1219_v40 }
 0x25e   :  { %v1361_v32 = vpack.c.bf16 %v881_v37, %v881_v37 }
 0x262   :  { %v715_v38 = vpop.f32.mrf.mxu0 }
 0x263   :  { %v883_v42 = vpop.f32.mrf.mxu1 }
 0x264   :  { %v4248_v44 = vpop.f32.mrf.mxu3  ;;  %v884_v47 = vadd.f32 %v883_v42, %v715_v38 }
 0x268   :  { %3006 = vmatmul.msk.bf16.gmra.mxu3 %vm926_vm1, %v1361_v32 }
 0x26a   :  { %v717_v45 = vpop.f32.mrf.mxu0 }
 0x26b   :  { %v885_v28 = vpop.f32.mrf.mxu1 }
 0x26c   :  { %v886_v49 = vadd.f32 %v885_v28, %v717_v45  ;;  %v1275_v50 = vpop.f32.mrf.mxu3 }
 0x26d   :  { %v1288_v19 = vadd.f32 %v1275_v50, %v1221_v63 }
 0x26e   :  { %v1425_v54 = vpack.c.bf16 %v886_v49, %v884_v47 }
 0x270   :  { %3011 = vmatmul.msk.bf16.vlgmr.msra.gmra.mxu2 %vm926_vm1, %v1425_v54 }
 0x272   :  { %v720_v55 = vpop.f32.mrf.mxu0 }
 0x273   :  { %v888_v56 = vpop.f32.mrf.mxu1 }
 0x274   :  { %v1277_v40 = vpop.f32.mrf.mxu3  ;;  %v889_v62 = vadd.f32 %v888_v56, %v720_v55 }
 0x27a   :  { %v722_v58 = vpop.f32.mrf.mxu0 }
 0x27b   :  { %v890_v60 = vpop.f32.mrf.mxu1 }
 0x27c   :  { %v891_v2 = vadd.f32 %v890_v60, %v722_v58  ;;  %v1280_v3 = vpop.f32.mrf.mxu3 }
 0x27d   :  { %v1290_v41 = vadd.f32 %v1280_v3, %v1223_v14 }
 0x27e   :  { %v1426_v59 = vpack.c.bf16 %v891_v2, %v889_v62  ;;  %v1017_v2 = vadd.f32 %v4023_v53, %v4093_v57 }
 0x280   :  { %3012 = vmatmul.msk.bf16.gmra.mxu2 %vm926_vm1, %v1426_v59  ;;  %v1088_v3 = vadd.f32 %v4164_v7, %v1017_v2 }
 0x282   :  { %v725_v4 = vpop.f32.mrf.mxu0  ;;  %v1155_v59 = vadd.f32 %v4223_v0, %v1088_v3  ;;  %v3540_v3 = vld [vmem:[%s4548_s5 + $0x8] sm:$0xff] }
 0x283   :  { %v893_v5 = vpop.f32.mrf.mxu1  ;;  %v1332_v8 = vpop.f32.mrf.mxu2 }
 0x284   :  { %v1282_v6 = vpop.f32.mrf.mxu3  ;;  %v1351_v63 = vadd.f32 %v1332_v8, %v1284_v1  ;;  %v894_v12 = vadd.f32 %v893_v5, %v725_v4  ;;  %v1222_v5 = vadd.f32 %v4241_v46, %v1155_v59  ;;  %v1007_v8 = vadd.f32 %v3988_v21, %v4056_v23  ;;  %v3608_v21 = vld [vmem:[%s4546_s3] ss:$0 sm:$0xff] }
 0x286   :  { %v1084_v53 = vadd.f32 %v4128_v34, %v1007_v8 }
 0x28a   :  { %v727_v9 = vpop.f32.mrf.mxu0 }
 0x28b   :  { %v895_v10 = vpop.f32.mrf.mxu1  ;;  %v1334_v61 = vpop.f32.mrf.mxu2 }
 0x28c   :  { %v896_v13 = vadd.f32 %v895_v10, %v727_v9  ;;  %v1289_v9 = vadd.f32 %v1277_v40, %v1222_v5 }
 0x28e   :  { %v1427_v15 = vpack.c.bf16 %v896_v13, %v894_v12 }
 0x290   :  { %3013 = vmatmul.msk.bf16.gmra.mxu2 %vm926_vm1, %v1427_v15 }
 0x292   :  { %v730_v16 = vpop.f32.mrf.mxu0 }
 0x293   :  { %v898_v20 = vpop.f32.mrf.mxu1  ;;  %v1337_v24 = vpop.f32.mrf.mxu2 }
 0x294   :  { %v1353_v14 = vadd.f32 %v1337_v24, %v1286_v18  ;;  %v899_v25 = vadd.f32 %v898_v20, %v730_v16 }
 0x296   :  { %v1428_v27 = vpack.c.bf16 %v899_v25, %v899_v25 }
 0x29a   :  { %v732_v26 = vpop.f32.mrf.mxu0 }
 0x29b   :  { %v900_v22 = vpop.f32.mrf.mxu1  ;;  %v1339_v29 = vpop.f32.mrf.mxu2 }
 0x2a0   :  { %3014 = vmatmul.msk.bf16.gmra.mxu2 %vm926_vm1, %v1428_v27 }
 0x2a3   :  { %v1342_v1 = vpop.f32.mrf.mxu2 }
 0x2a4   :  { %v1355_v30 = vadd.f32 %v1342_v1, %v1288_v19 }
 0x2ab   :  { %v1344_v17 = vpop.f32.mrf.mxu2 }
 0x2ac   :  { %v1356_v7 = vadd.f32 %v1344_v17, %v1289_v9 }
 0x2b3   :  { %v1347_v31 = vpop.f32.mrf.mxu2 }
 0x2b4   :  { %v1357_v35 = vadd.f32 %v1347_v31, %v1290_v41  ;;  %v1012_v41 = vadd.f32 %v4005_v36, %v4074_v39  ;;  %v1151_v36 = vadd.f32 %v4186_v33, %v1084_v53 }
 0x2b6   :  { %v1086_v4 = vadd.f32 %v4146_v48, %v1012_v41  ;;  %v1218_v46 = vadd.f32 %v4232_v43, %v1151_v36  ;;  %v3539_v41 = vld [vmem:[%s4548_s5] sm:$0xff]  ;;  %v3545_v36 = vld [vmem:[%s4548_s5 + $0x30] sm:$0xff] }
 0x2b8   :  { %v1285_v34 = vadd.f32 %v4245_v11, %v1218_v46 }
 0x2ba   :  { %v1352_v33 = vadd.f32 %v1334_v61, %v1285_v34 }
 0x2bb   :  { %v1399_v37 = vpop.f32.mrf.mxu3  ;;  %v1349_v38 = vpop.f32.mrf.mxu2 }
 0x2bc   :  { %v1418_v42 = vadd.f32 %v1399_v37, %v1351_v63  ;;  %v1153_v63 = vadd.f32 %v4204_v51, %v1086_v4 }
 0x2be   :  { %v1220_v57 = vadd.f32 %v4236_v52, %v1153_v63  ;;  %v3543_v63 = vld [vmem:[%s4548_s5 + $0x20] sm:$0xff] }
 0x2c0   :  { %v1287_v39 = vadd.f32 %v4248_v44, %v1220_v57  ;;  %v3546_v57 = vld [vmem:[%s4548_s5 + $0x38] sm:$0xff] }
 0x2c2   :  { %v1354_v10 = vadd.f32 %v1339_v29, %v1287_v39 }
 0x2c3   :  { %v1401_v32 = vpop.f32.mrf.mxu3 }
 0x2c4   :  { %v1419_v20 = vadd.f32 %v1401_v32, %v1352_v33  ;;  %v3554_v33 = vld [vmem:[%s4548_s5 + $0x78] sm:$0xff] }
 0x2cb   :  { %v1404_v45 = vpop.f32.mrf.mxu3 }
 0x2cc   :  { %v1420_v28 = vadd.f32 %v1404_v45, %v1353_v14 }
 0x2d3   :  { %v1406_v47 = vpop.f32.mrf.mxu3 }
 0x2d4   :  { %v1421_v51 = vadd.f32 %v1406_v47, %v1354_v10  ;;  %v3530_v47 = vld [vmem:[%s4547_s4] sm:$0xff] }
 0x2d5   :  { %v3547_v10 = vld [vmem:[%s4548_s5 + $0x40] sm:$0xff] }
 0x2db   :  { %v1409_v18 = vpop.f32.mrf.mxu3 }
 0x2dc   :  { %v1422_v49 = vadd.f32 %v1409_v18, %v1355_v30  ;;  %v3532_v18 = vld [vmem:[%s4547_s4 + $0x10] sm:$0xff] }
 0x2e3   :  { %v1411_v50 = vpop.f32.mrf.mxu3 }
 0x2e4   :  { %v1423_v0 = vadd.f32 %v1411_v50, %v1356_v7  ;;  %v3534_v50 = vld [vmem:[%s4547_s4 + $0x20] sm:$0xff] }
 0x2eb   :  { %v1414_v54 = vpop.f32.mrf.mxu3 }
 0x2ec   :  { %v1424_v48 = vadd.f32 %v1414_v54, %v1357_v35  ;;  %v3535_v54 = vld [vmem:[%s4547_s4 + $0x28] sm:$0xff] }
 0x2f3   :  { %v1416_v55 = vpop.f32.mrf.mxu3  ;;  %v1466_v56 = vpop.f32.mrf.mxu2 }
 0x2f4   :  { %v1485_v1 = vadd.f32 %v1466_v56, %v1418_v42  ;;  %v3531_v42 = vld [vmem:[%s4547_s4 + $0x8] sm:$0xff]  ;;  %v3536_v55 = vld [vmem:[%s4547_s4 + $0x30] sm:$0xff]  ;;  %v3537_v56 = vld [vmem:[%s4547_s4 + $0x38] sm:$0xff] }
 0x2f6   :  { %v1496_v35 = vadd.f32 %v3608_v21, %v1485_v1 }
 0x2f8   :  { %v1503_v45 = vmax.f32 %v1496_v35, 0.0 }
 0x2fb   :  { %v1468_v58 = vpop.f32.mrf.mxu2 }
 0x2fc   :  { %v1486_v25 = vadd.f32 %v1468_v58, %v1419_v20  ;;  %v3542_v58 = vld [vmem:[%s4548_s5 + $0x18] sm:$0xff]  ;;  %v3556_v20 = vld [vmem:[%s4548_s5 + $0x88] sm:$0xff] }
 0x2fd   :  { %1695 = vmatpush.bf16.msrb.mxu2 %v3542_v58 }
 0x2fe   :  { %v1497_v17 = vadd.f32 %v3608_v21, %v1486_v25 }
 0x300   :  { %v1504_v38 = vmax.f32 %v1497_v17, 0.0 }
 0x303   :  { %v1471_v60 = vpop.f32.mrf.mxu2 }
 0x304   :  { %v1487_v24 = vadd.f32 %v1471_v60, %v1420_v28  ;;  %v1510_v28 = vpack.c.bf16 %v1504_v38, %v1503_v45  ;;  %v3541_v60 = vld [vmem:[%s4548_s5 + $0x10] sm:$0xff] }
 0x305   :  { %1696 = vmatpush.bf16.msrb.mxu2 %v3541_v60 }
 0x306   :  { %v1498_v30 = vadd.f32 %v3608_v21, %v1487_v24  ;;  %v3555_v24 = vld [vmem:[%s4548_s5 + $0x80] sm:$0xff] }
 0x308   :  { %v1505_v37 = vmax.f32 %v1498_v30, 0.0 }
 0x309   :  { %1724 = vmatpush.bf16.msra.mxu2 %v3540_v3 }
 0x30b   :  { %v1473_v62 = vpop.f32.mrf.mxu2 }
 0x30c   :  { %v1488_v15 = vadd.f32 %v1473_v62, %v1421_v51  ;;  %v3538_v62 = vld [vmem:[%s4547_s4 + $0x40] sm:$0xff]  ;;  %v3549_v51 = vld [vmem:[%s4548_s5 + $0x50] sm:$0xff] }
 0x30d   :  { %1725 = vmatpush.bf16.msra.mxu2 %v3539_v41 }
 0x30e   :  { %v1499_v26 = vadd.f32 %v3608_v21, %v1488_v15 }
 0x310   :  { %v1506_v31 = vmax.f32 %v1499_v26, 0.0 }
 0x312   :  { %v1511_v32 = vpack.c.bf16 %v1506_v31, %v1505_v37  ;;  %v3604_v31 = vld [vmem:[%s4553_s10 + $0x38] sm:$0xff] }
 0x313   :  { %v1476_v19 = vpop.f32.mrf.mxu2  ;;  %2610 = vmatpush.bf16.msrb.mxu0 %v3604_v31  ;;  %v3570_v31 = vld [vmem:[%s4551_s8 + $0x48] sm:$0xff] }
 0x314   :  { %v1489_v52 = vadd.f32 %v1476_v19, %v1422_v49  ;;  %v3533_v49 = vld [vmem:[%s4547_s4 + $0x18] sm:$0xff]  ;;  %v3552_v19 = vld [vmem:[%s4548_s5 + $0x68] sm:$0xff] }
 0x316   :  { %v1500_v43 = vadd.f32 %v3608_v21, %v1489_v52 }
 0x318   :  { %v1507_v11 = vmax.f32 %v1500_v43, 0.0 }
 0x31b   :  { %v1478_v6 = vpop.f32.mrf.mxu2 }
 0x31c   :  { %v1490_v12 = vadd.f32 %v1478_v6, %v1423_v0  ;;  %v3544_v6 = vld [vmem:[%s4548_s5 + $0x28] sm:$0xff] }
 0x31e   :  { %v1501_v44 = vadd.f32 %v3608_v21, %v1490_v12 }
 0x320   :  { %v1508_v22 = vmax.f32 %v1501_v44, 0.0  ;;  %v3553_v44 = vld [vmem:[%s4548_s5 + $0x70] sm:$0xff] }
 0x322   :  { %v1512_v61 = vpack.c.bf16 %v1508_v22, %v1507_v11 }
 0x323   :  { %v1481_v13 = vpop.f32.mrf.mxu2 }
 0x324   :  { %v1491_v23 = vadd.f32 %v1481_v13, %v1424_v48  ;;  %v3548_v48 = vld [vmem:[%s4548_s5 + $0x48] sm:$0xff]  ;;  %v3551_v13 = vld [vmem:[%s4548_s5 + $0x60] sm:$0xff] }
 0x326   :  { %v1502_v40 = vadd.f32 %v3608_v21, %v1491_v23  ;;  %v3550_v23 = vld [vmem:[%s4548_s5 + $0x58] sm:$0xff] }
 0x328   :  { %v1509_v16 = vmax.f32 %v1502_v40, 0.0 }
 0x32a   :  { %v1513_v14 = vpack.c.bf16 %v1509_v16, %v1509_v16 }
 0x32b   :  { %v1483_v27 = vpop.f32.mrf.mxu2 }
 0x32c   :  { %v1606_v29 = vsel %vm939_vm0, %v1513_v14, 0 }
 0x32d   :  { %1612 = vmatpush.bf16.msra.mxu3 %v1606_v29 }
 0x331   :  { %1613 = vmatpush.bf16.msra.mxu3 %v1512_v61 }
 0x335   :  { %1614 = vmatpush.bf16.msra.mxu3 %v1511_v32 }
 0x339   :  { %1615 = vmatpush.bf16.msra.mxu3 %v1510_v28 }
 0x33c   :  { %3051 = vmatmul.msk.bf16.vlgmr.msra.gmra.mxu3 %vm1577_vm2, %v3530_v47 }
 0x33d   :  { %1907 = vmatpush.bf16.msrb.mxu3 %v3552_v19 }
 0x341   :  { %1908 = vmatpush.bf16.msrb.mxu3 %v3551_v13 }
 0x345   :  { %1981 = vmatpush.bf16.msra.mxu3 %v3556_v20  ;;  %v3566_v20 = vld [vmem:[%s4551_s8 + $0x28] sm:$0xff] }
 0x349   :  { %1982 = vmatpush.bf16.msra.mxu3 %v3555_v24  ;;  %v3565_v24 = vld [vmem:[%s4551_s8 + $0x20] sm:$0xff] }
 0x34c   :  { %3052 = vmatmul.msk.bf16.gmra.mxu3 %vm1577_vm2, %v3531_v42  ;;  %v3603_v42 = vld [vmem:[%s4553_s10 + $0x30] sm:$0xff] }
 0x34d   :  { %2611 = vmatpush.bf16.msrb.mxu0 %v3603_v42  ;;  %v3581_v42 = vld [vmem:[%s4551_s8 + $0xa0] sm:$0xff] }
 0x35c   :  { %3053 = vmatmul.msk.bf16.gmra.mxu3 %vm1577_vm2, %v3532_v18 }
 0x36c   :  { %3054 = vmatmul.msk.bf16.gmra.mxu3 %vm1577_vm2, %v3533_v49 }
 0x37c   :  { %3055 = vmatmul.msk.bf16.gmra.mxu3 %vm1577_vm2, %v3534_v50 }
 0x38c   :  { %3056 = vmatmul.msk.bf16.gmra.mxu3 %vm1577_vm2, %v3535_v54 }
 0x39c   :  { %3057 = vmatmul.msk.bf16.gmra.mxu3 %vm1577_vm2, %v3536_v55 }
 0x3ac   :  { %3058 = vmatmul.msk.bf16.gmra.mxu3 %vm1577_vm2, %v3537_v56 }
 0x3bc   :  { %3059 = vmatmul.msk.bf16.gmra.mxu3 %vm1577_vm2, %v3538_v62 }
 0x3bf   :  { %v1617_v2 = vpop.f32.mrf.mxu3 }
 0x3c7   :  { %v1619_v59 = vpop.f32.mrf.mxu3 }
 0x3c8   :  { %v1662_v7 = vpack.c.bf16 %v1619_v59, %v1617_v2 }
 0x3cf   :  { %v1622_v4 = vpop.f32.mrf.mxu3 }
 0x3d7   :  { %v1624_v5 = vpop.f32.mrf.mxu3 }
 0x3d8   :  { %v1667_v8 = vpack.c.bf16 %v1624_v5, %v1622_v4 }
 0x3da   :  { %3072 = vmatmul.msk.bf16.vlgmr.msrb.gmra.mxu2 %vm1685_vm3, %v1667_v8 }
 0x3db   :  { %1759 = vmatpush.bf16.msrb.mxu2 %v3544_v6 }
 0x3df   :  { %v1627_v9 = vpop.f32.mrf.mxu3  ;;  %1760 = vmatpush.bf16.msrb.mxu2 %v3543_v63 }
 0x3e7   :  { %v1629_v53 = vpop.f32.mrf.mxu3 }
 0x3e8   :  { %v1732_v46 = vpack.c.bf16 %v1629_v53, %v1627_v9  ;;  %v3602_v9 = vld [vmem:[%s4553_s10 + $0x28] sm:$0xff] }
 0x3e9   :  { %2612 = vmatpush.bf16.msrb.mxu0 %v3602_v9  ;;  %v3587_v9 = vld [vmem:[%s4551_s8 + $0xd0] sm:$0xff] }
 0x3ea   :  { %3081 = vmatmul.msk.bf16.vlgmr.msra.gmra.mxu2 %vm1685_vm3, %v1662_v7  ;;  %v3609_v7 = vld [vmem:[%s4549_s6] ss:$0 sm:$0xff] }
 0x3eb   :  { %1796 = vmatpush.bf16.msra.mxu2 %v3546_v57 }
 0x3ef   :  { %v1632_v39 = vpop.f32.mrf.mxu3  ;;  %1797 = vmatpush.bf16.msra.mxu2 %v3545_v36 }
 0x3f7   :  { %v1634_v0 = vpop.f32.mrf.mxu3 }
 0x3f8   :  { %v1769_v34 = vpack.c.bf16 %v1634_v0, %v1632_v39 }
 0x3fa   :  { %3094 = vmatmul.msk.bf16.vlgmr.msrb.gmra.mxu2 %vm1685_vm3, %v1732_v46 }
 0x3fb   :  { %1833 = vmatpush.bf16.msrb.mxu2 %v3548_v48 }
 0x3ff   :  { %v1637_v12 = vpop.f32.mrf.mxu3  ;;  %1834 = vmatpush.bf16.msrb.mxu2 %v3547_v10 }
 0x407   :  { %v1639_v21 = vpop.f32.mrf.mxu3 }
 0x408   :  { %v1806_v15 = vpack.c.bf16 %v1639_v21, %v1637_v12  ;;  %v3557_v21 = vld [vmem:[%s4550_s7] sm:$0xff] }
 0x40a   :  { %3107 = vmatmul.msk.bf16.vlgmr.msra.gmra.mxu2 %vm1685_vm3, %v1769_v34  ;;  %v3559_v34 = vld [vmem:[%s4550_s7 + $0x10] sm:$0xff] }
 0x40b   :  { %1870 = vmatpush.bf16.msra.mxu2 %v3550_v23  ;;  %v3558_v23 = vld [vmem:[%s4550_s7 + $0x8] sm:$0xff] }
 0x40f   :  { %v1642_v52 = vpop.f32.mrf.mxu3  ;;  %1871 = vmatpush.bf16.msra.mxu2 %v3549_v51  ;;  %v3601_v51 = vld [vmem:[%s4553_s10 + $0x20] sm:$0xff] }
 0x410   :  { %2613 = vmatpush.bf16.msrb.mxu0 %v3601_v51 }
 0x417   :  { %v1644_v40 = vpop.f32.mrf.mxu3 }
 0x418   :  { %v1843_v14 = vpack.c.bf16 %v1644_v40, %v1642_v52  ;;  %v3568_v52 = vld [vmem:[%s4551_s8 + $0x38] sm:$0xff] }
 0x419   :  { %v3560_v40 = vld [vmem:[%s4550_s7 + $0x18] sm:$0xff] }
 0x41a   :  { %3120 = vmatmul.msk.bf16.vlgmr.msrb.gmra.mxu2 %vm1685_vm3, %v1806_v15 }
 0x41b   :  { %1944 = vmatpush.bf16.msrb.mxu2 %v3554_v33  ;;  %v2008_v33 = vld [vmem:[%s4550_s7 + $0x20] sm:$0xf] }
 0x41c   :  { %v2026_v15 = vunpack.c.l.b16 %v2008_v33 }
 0x41f   :  { %v1647_v16 = vpop.f32.mrf.mxu3  ;;  %1945 = vmatpush.bf16.msrb.mxu2 %v3553_v44  ;;  %v2031_v44 = vpack.c.b16 %v2026_v15, %v2026_v15 }
 0x427   :  { %v1649_v43 = vpop.f32.mrf.mxu3 }
 0x428   :  { %v1880_v25 = vpack.c.bf16 %v1649_v43, %v1647_v16  ;;  %v3567_v16 = vld [vmem:[%s4551_s8 + $0x30] sm:$0xff]  ;;  %v3564_v43 = vld [vmem:[%s4551_s8 + $0x18] sm:$0xff] }
 0x42a   :  { %3133 = vmatmul.msk.bf16.vlgmr.msra.gmra.mxu2 %vm1685_vm3, %v1843_v14  ;;  %3146 = vmatmul.msk.bf16.vlgmr.msrb.gmra.mxu3 %vm1685_vm3, %v1880_v25  ;;  %v3563_v14 = vld [vmem:[%s4551_s8 + $0x10] sm:$0xff]  ;;  %v3562_v25 = vld [vmem:[%s4551_s8 + $0x8] sm:$0xff] }
 0x42b   :  { %2132 = vmatpush.bf16.msrb.mxu3 %v3568_v52 }
 0x42f   :  { %v1652_v26 = vpop.f32.mrf.mxu3  ;;  %2133 = vmatpush.bf16.msrb.mxu3 %v3567_v16 }
 0x433   :  { %2134 = vmatpush.bf16.msrb.mxu3 %v3566_v20 }
 0x437   :  { %v1654_v22 = vpop.f32.mrf.mxu3  ;;  %2135 = vmatpush.bf16.msrb.mxu3 %v3565_v24 }
 0x438   :  { %v1917_v27 = vpack.c.bf16 %v1654_v22, %v1652_v26  ;;  %v3561_v26 = vld [vmem:[%s4551_s8] sm:$0xff]  ;;  %v3600_v22 = vld [vmem:[%s4553_s10 + $0x18] sm:$0xff] }
 0x439   :  { %2614 = vmatpush.bf16.msrb.mxu0 %v3600_v22 }
 0x43a   :  { %3159 = vmatmul.msk.bf16.vlgmr.msrb.gmra.mxu2 %vm1685_vm3, %v1917_v27 }
 0x43f   :  { %v1657_v29 = vpop.f32.mrf.mxu3 }
 0x447   :  { %v1659_v1 = vpop.f32.mrf.mxu3 }
 0x448   :  { %v1954_v30 = vpack.c.bf16 %v1659_v1, %v1657_v29  ;;  %v3572_v1 = vld [vmem:[%s4551_s8 + $0x58] sm:$0xff] }
 0x44a   :  { %3172 = vmatmul.msk.bf16.vlgmr.msra.gmra.mxu3 %vm1685_vm3, %v1954_v30 }
 0x44b   :  { %2172 = vmatpush.bf16.msra.mxu3 %v3564_v43 }
 0x44f   :  { %2173 = vmatpush.bf16.msra.mxu3 %v3563_v14 }
 0x453   :  { %2174 = vmatpush.bf16.msra.mxu3 %v3562_v25  ;;  %v3597_v25 = vld [vmem:[%s4553_s10] sm:$0xff] }
 0x457   :  { %2175 = vmatpush.bf16.msra.mxu3 %v3561_v26 }
 0x45d   :  { %v1698_v11 = vpop.f32.mrf.mxu2 }
 0x465   :  { %v1700_v17 = vpop.f32.mrf.mxu2 }
 0x46d   :  { %v1727_v61 = vpop.f32.mrf.mxu2 }
 0x46e   :  { %v1728_v35 = vadd.f32 %v1727_v61, %v1698_v11  ;;  %v3571_v11 = vld [vmem:[%s4551_s8 + $0x50] sm:$0xff] }
 0x475   :  { %v1729_v37 = vpop.f32.mrf.mxu2 }
 0x476   :  { %v1730_v58 = vadd.f32 %v1729_v37, %v1700_v17  ;;  %v3584_v17 = vld [vmem:[%s4551_s8 + $0xb8] sm:$0xff]  ;;  %v3583_v37 = vld [vmem:[%s4551_s8 + $0xb0] sm:$0xff] }
 0x47d   :  { %v1762_v38 = vpop.f32.mrf.mxu2 }
 0x47e   :  { %v1767_v55 = vadd.f32 %v1762_v38, %v1728_v35  ;;  %v3569_v35 = vld [vmem:[%s4551_s8 + $0x40] sm:$0xff]  ;;  %v3576_v38 = vld [vmem:[%s4551_s8 + $0x78] sm:$0xff] }
 0x485   :  { %v1764_v32 = vpop.f32.mrf.mxu2 }
 0x486   :  { %v1768_v19 = vadd.f32 %v1764_v32, %v1730_v58  ;;  %v3580_v58 = vld [vmem:[%s4551_s8 + $0x98] sm:$0xff] }
 0x48d   :  { %v1799_v45 = vpop.f32.mrf.mxu2 }
 0x48e   :  { %v1804_v60 = vadd.f32 %v1799_v45, %v1767_v55 }
 0x495   :  { %v1801_v28 = vpop.f32.mrf.mxu2 }
 0x496   :  { %v1805_v3 = vadd.f32 %v1801_v28, %v1768_v19  ;;  %v3575_v28 = vld [vmem:[%s4551_s8 + $0x70] sm:$0xff] }
 0x497   :  { %v3579_v19 = vld [vmem:[%s4551_s8 + $0x90] sm:$0xff] }
 0x49d   :  { %v1836_v47 = vpop.f32.mrf.mxu2 }
 0x49e   :  { %v1841_v2 = vadd.f32 %v1836_v47, %v1804_v60  ;;  %v3582_v47 = vld [vmem:[%s4551_s8 + $0xa8] sm:$0xff] }
 0x4a5   :  { %v1838_v18 = vpop.f32.mrf.mxu2 }
 0x4a6   :  { %v1842_v59 = vadd.f32 %v1838_v18, %v1805_v3  ;;  %v3574_v18 = vld [vmem:[%s4551_s8 + $0x68] sm:$0xff]  ;;  %v3589_v3 = vld [vmem:[%s4551_s8 + $0xe0] sm:$0xff] }
 0x4ad   :  { %v1873_v49 = vpop.f32.mrf.mxu2  ;;  %v1910_v50 = vpop.f32.mrf.mxu3 }
 0x4ae   :  { %v1878_v41 = vadd.f32 %v1873_v49, %v1841_v2  ;;  %v3590_v2 = vld [vmem:[%s4551_s8 + $0xe8] sm:$0xff] }
 0x4b0   :  { %v1915_v5 = vadd.f32 %v1910_v50, %v1878_v41  ;;  %v3592_v50 = vld [vmem:[%s4551_s8 + $0xf8] sm:$0xff]  ;;  %v3578_v41 = vld [vmem:[%s4551_s8 + $0x88] sm:$0xff] }
 0x4b5   :  { %v1875_v54 = vpop.f32.mrf.mxu2  ;;  %v1912_v56 = vpop.f32.mrf.mxu3 }
 0x4b6   :  { %v1879_v6 = vadd.f32 %v1875_v54, %v1842_v59  ;;  %v3573_v54 = vld [vmem:[%s4551_s8 + $0x60] sm:$0xff] }
 0x4b8   :  { %v1916_v53 = vadd.f32 %v1912_v56, %v1879_v6  ;;  %v3591_v56 = vld [vmem:[%s4551_s8 + $0xf0] sm:$0xff] }
 0x4bd   :  { %v1947_v62 = vpop.f32.mrf.mxu2 }
 0x4be   :  { %v1952_v8 = vadd.f32 %v1947_v62, %v1915_v5  ;;  %v3588_v5 = vld [vmem:[%s4551_s8 + $0xd8] sm:$0xff] }
 0x4c5   :  { %v1949_v63 = vpop.f32.mrf.mxu2 }
 0x4c6   :  { %v1953_v36 = vadd.f32 %v1949_v63, %v1916_v53  ;;  %v3599_v53 = vld [vmem:[%s4553_s10 + $0x10] sm:$0xff] }
 0x4c7   :  { %2615 = vmatpush.bf16.msrb.mxu0 %v3599_v53 }
 0x4cd   :  { %v1984_v4 = vpop.f32.mrf.mxu3 }
 0x4ce   :  { %v1989_v57 = vadd.f32 %v1984_v4, %v1952_v8  ;;  %v3577_v4 = vld [vmem:[%s4551_s8 + $0x80] sm:$0xff] }
 0x4d0   :  { %v1995_v0 = vadd.f32 %v3609_v7, %v1989_v57  ;;  %v3586_v57 = vld [vmem:[%s4551_s8 + $0xc8] sm:$0xff] }
 0x4d2   :  { %v1997_v10 = vmax.f32 %v1995_v0, 0.0  ;;  %v3596_v0 = vld [vmem:[%s4551_s8 + $0x118] sm:$0xff] }
 0x4d5   :  { %v1986_v39 = vpop.f32.mrf.mxu3 }
 0x4d6   :  { %v1990_v48 = vadd.f32 %v1986_v39, %v1953_v36  ;;  %v3585_v36 = vld [vmem:[%s4551_s8 + $0xc0] sm:$0xff] }
 0x4d8   :  { %v1996_v46 = vadd.f32 %v3609_v7, %v1990_v48 }
 0x4da   :  { %v1998_v12 = vmax.f32 %v1996_v46, 0.0  ;;  %v3595_v46 = vld [vmem:[%s4551_s8 + $0x110] sm:$0xff] }
 0x4dc   :  { %v1999_v13 = vpack.c.bf16 %v1998_v12, %v1997_v10  ;;  %v3594_v10 = vld [vmem:[%s4551_s8 + $0x108] sm:$0xff]  ;;  %v3593_v12 = vld [vmem:[%s4551_s8 + $0x100] sm:$0xff] }
 0x4de   :  { %2055 = vmatpush.bf16.msra.mxu2 %v1999_v13 }
 0x4e1   :  { %3189 = vmatmul.msk.bf16.vlgmr.msra.gmra.mxu2 %vm2032_vm4, %v3557_v21 }
 0x4e2   :  { %2375 = vmatpush.bf16.msrb.mxu2 %v3584_v17 }
 0x4e6   :  { %2376 = vmatpush.bf16.msrb.mxu2 %v3583_v37  ;;  %v3610_v37 = vld [vmem:[%s4552_s9] ss:$0 sm:$0xff] }
 0x4ea   :  { %2377 = vmatpush.bf16.msrb.mxu2 %v3582_v47 }
 0x4ee   :  { %2378 = vmatpush.bf16.msrb.mxu2 %v3581_v42 }
 0x4f1   :  { %3190 = vmatmul.msk.bf16.gmra.mxu2 %vm2032_vm4, %v3558_v23  ;;  %v3598_v23 = vld [vmem:[%s4553_s10 + $0x8] sm:$0xff] }
 0x4f2   :  { %2477 = vmatpush.bf16.msra.mxu2 %v3592_v50  ;;  %2616 = vmatpush.bf16.msrb.mxu0 %v3598_v23 }
 0x4f6   :  { %2478 = vmatpush.bf16.msra.mxu2 %v3591_v56  ;;  %2617 = vmatpush.bf16.msrb.mxu0 %v3597_v25 }
 0x4fa   :  { %2479 = vmatpush.bf16.msra.mxu2 %v3590_v2 }
 0x4fe   :  { %2480 = vmatpush.bf16.msra.mxu2 %v3589_v3 }
 0x501   :  { %3191 = vmatmul.msk.bf16.gmra.mxu2 %vm2032_vm4, %v3559_v34 }
 0x511   :  { %3192 = vmatmul.msk.bf16.gmra.mxu2 %vm2032_vm4, %v3560_v40 }
 0x521   :  { %3193 = vmatmul.msk.bf16.gmra.mxu2 %vm2032_vm4, %v2031_v44 }
 0x564   :  { %v2057_v27 = vpop.f32.mrf.mxu2 }
 0x565   :  { %v2081_v45 = vpack.c.bf16 %v2057_v27, %v2057_v27 }
 0x56c   :  { %v2059_v29 = vpop.f32.mrf.mxu2 }
 0x56d   :  { %v2090_v30 = vpack.c.bf16 %v2059_v29, %v2059_v29 }
 0x56f   :  { %3218 = vmatmul.msk.bf16.vlgmr.msrb.gmra.mxu3 %vm2124_vm5, %v2090_v30 }
 0x570   :  { %2222 = vmatpush.bf16.msrb.mxu3 %v3572_v1 }
 0x574   :  { %2223 = vmatpush.bf16.msrb.mxu3 %v3571_v11  ;;  %v2062_v61 = vpop.f32.mrf.mxu2 }
 0x575   :  { %v2181_v55 = vpack.c.bf16 %v2062_v61, %v2062_v61 }
 0x578   :  { %2224 = vmatpush.bf16.msrb.mxu3 %v3570_v31 }
 0x57c   :  { %2225 = vmatpush.bf16.msrb.mxu3 %v3569_v35  ;;  %v2064_v32 = vpop.f32.mrf.mxu2 }
 0x57d   :  { %v2232_v8 = vpack.c.bf16 %v2064_v32, %v2064_v32 }
 0x57f   :  { %3235 = vmatmul.msk.bf16.vlgmr.msra.gmra.mxu3 %vm2124_vm5, %v2081_v45 }
 0x580   :  { %2273 = vmatpush.bf16.msra.mxu3 %v3576_v38 }
 0x584   :  { %2274 = vmatpush.bf16.msra.mxu3 %v3575_v28  ;;  %v2067_v49 = vpop.f32.mrf.mxu2 }
 0x585   :  { %v2283_v39 = vpack.c.bf16 %v2067_v49, %v2067_v49 }
 0x588   :  { %2275 = vmatpush.bf16.msra.mxu3 %v3574_v18  ;;  %v2545_v18 = vld [vmem:[%s4554_s11] sm:$0x1] }
 0x58c   :  { %2276 = vmatpush.bf16.msra.mxu3 %v3573_v54  ;;  %v2069_v60 = vpop.f32.mrf.mxu2 }
 0x58d   :  { %v2334_v62 = vpack.c.bf16 %v2069_v60, %v2069_v60 }
 0x58f   :  { %3260 = vmatmul.msk.bf16.vlgmr.msrb.gmra.mxu3 %vm2124_vm5, %v2181_v55  ;;  %3335 = vmatmul.msk.bf16.vlgmr.msrb.gmra.mxu2 %vm2124_vm5, %v2334_v62 }
 0x590   :  { %2324 = vmatpush.bf16.msrb.mxu3 %v3580_v58 }
 0x594   :  { %2325 = vmatpush.bf16.msrb.mxu3 %v3579_v19  ;;  %v2072_v59 = vpop.f32.mrf.mxu2 }
 0x595   :  { %v2385_v13 = vpack.c.bf16 %v2072_v59, %v2072_v59 }
 0x598   :  { %2326 = vmatpush.bf16.msrb.mxu3 %v3578_v41 }
 0x59c   :  { %2327 = vmatpush.bf16.msrb.mxu3 %v3577_v4  ;;  %v2074_v6 = vpop.f32.mrf.mxu2 }
 0x59d   :  { %v2436_v63 = vpack.c.bf16 %v2074_v6, %v2074_v6 }
 0x59f   :  { %3285 = vmatmul.msk.bf16.vlgmr.msra.gmra.mxu3 %vm2124_vm5, %v2232_v8  ;;  %3385 = vmatmul.msk.bf16.vlgmr.msra.gmra.mxu2 %vm2124_vm5, %v2436_v63 }
 0x5a0   :  { %2426 = vmatpush.bf16.msra.mxu3 %v3588_v5 }
 0x5a4   :  { %2427 = vmatpush.bf16.msra.mxu3 %v3587_v9  ;;  %v2077_v7 = vpop.f32.mrf.mxu2 }
 0x5a5   :  { %v2487_v21 = vpack.c.bf16 %v2077_v7, %v2077_v7 }
 0x5a8   :  { %2428 = vmatpush.bf16.msra.mxu3 %v3586_v57 }
 0x5ac   :  { %2429 = vmatpush.bf16.msra.mxu3 %v3585_v36  ;;  %v2079_v48 = vpop.f32.mrf.mxu2 }
 0x5af   :  { %3310 = vmatmul.msk.bf16.vlgmr.msrb.gmra.mxu3 %vm2124_vm5, %v2283_v39 }
 0x5b0   :  { %2528 = vmatpush.bf16.msrb.mxu3 %v3596_v0 }
 0x5b4   :  { %2529 = vmatpush.bf16.msrb.mxu3 %v3595_v46 }
 0x5b8   :  { %2530 = vmatpush.bf16.msrb.mxu3 %v3594_v10 }
 0x5bc   :  { %2531 = vmatpush.bf16.msrb.mxu3 %v3593_v12 }
 0x5bf   :  { %3360 = vmatmul.msk.bf16.vlgmr.msra.gmra.mxu3 %vm2124_vm5, %v2385_v13 }
 0x5cf   :  { %3410 = vmatmul.msk.bf16.vlgmr.msrb.gmra.mxu3 %vm2124_vm5, %v2487_v21 }
 0x5f2   :  { %v2137_v34 = vpop.f32.mrf.mxu3 }
 0x5fa   :  { %v2139_v51 = vpop.f32.mrf.mxu3 }
 0x602   :  { %v2177_v52 = vpop.f32.mrf.mxu3 }
 0x603   :  { %v2178_v40 = vadd.f32 %v2177_v52, %v2137_v34 }
 0x60a   :  { %v2179_v33 = vpop.f32.mrf.mxu3 }
 0x612   :  { %v2227_v15 = vpop.f32.mrf.mxu3  ;;  %v2380_v44 = vpop.f32.mrf.mxu2 }
 0x613   :  { %v2231_v1 = vadd.f32 %v2227_v15, %v2178_v40 }
 0x61a   :  { %v2229_v16 = vpop.f32.mrf.mxu3  ;;  %v2382_v20 = vpop.f32.mrf.mxu2 }
 0x622   :  { %v2278_v24 = vpop.f32.mrf.mxu3  ;;  %v2482_v43 = vpop.f32.mrf.mxu2 }
 0x623   :  { %v2282_v30 = vadd.f32 %v2278_v24, %v2231_v1 }
 0x62a   :  { %v2280_v14 = vpop.f32.mrf.mxu3  ;;  %v2484_v26 = vpop.f32.mrf.mxu2 }
 0x632   :  { %v2329_v22 = vpop.f32.mrf.mxu3 }
 0x633   :  { %v2333_v11 = vadd.f32 %v2329_v22, %v2282_v30 }
 0x635   :  { %v2384_v31 = vadd.f32 %v2380_v44, %v2333_v11 }
 0x63a   :  { %v2331_v27 = vpop.f32.mrf.mxu3 }
 0x642   :  { %v2431_v29 = vpop.f32.mrf.mxu3 }
 0x643   :  { %v2435_v61 = vadd.f32 %v2431_v29, %v2384_v31 }
 0x645   :  { %v2486_v35 = vadd.f32 %v2482_v43, %v2435_v61 }
 0x64a   :  { %v2433_v17 = vpop.f32.mrf.mxu3 }
 0x652   :  { %v2533_v38 = vpop.f32.mrf.mxu3 }
 0x653   :  { %v2537_v32 = vadd.f32 %v2533_v38, %v2486_v35 }
 0x655   :  { %v2542_v45 = vadd.f32 %v3610_v37, %v2537_v32 }
 0x657   :  { %v2543_v28 = vmax.f32 %v2542_v45, 0.0 }
 0x659   :  { %v2544_v47 = vpack.c.bf16 %v2543_v28, %v2543_v28 }
 0x65a   :  { %v2535_v42 = vpop.f32.mrf.mxu3 }
 0x65b   :  { %2618 = vmatmul.bf16.vlgmr.msrb.gmra.mxu0 %v2544_v47 }
 0x6d8   :  { %v2619_v49 = vpop.f32.mrf.mxu0 }
 0x6d9   :  { %v2623_v50 = vadd.f32 %v2619_v49, %v2545_v18 }
 0x6db   :  { %2625 = vst.msk [vmem:[%s4555_s12] sm:$0x1] %vm2624_vm6, %v2623_v50 }
 0x6e0   :  { %v2621_v54 = vpop.f32.mrf.mxu0 }
 0x6e1   :  { %2630 = vsyncpa [#allocation3], 1 }

</bundles_post_ra>
